<compile_context>
chip_gen: v7x
topology: tpu7x:2x2x1
jax: 0.10.0
libtpu: 0.0.40
codegen_flags: <defaults>
</compile_context>

<pallas_src>
import math

import jax
import jax.numpy as jnp
from jax import lax
from jax.experimental import pallas as pl
from jax.experimental.pallas import tpu as pltpu


_VMEM_LIMIT = 64 * 1024 * 1024  # fits v5e/v6e (128 MiB) and v7x (64 MiB physical)


def _compiler_params(*sem):
    return pltpu.CompilerParams(dimension_semantics=tuple(sem),
                                vmem_limit_bytes=_VMEM_LIMIT)


def _pick_cout_tile(cout):
    """Largest 128-aligned Cout tile (<=512) that divides Cout; small Cout stays whole."""
    for t in (512, 256, 128):
        if cout > t and cout % t == 0:
            return t
    return cout


# --------------------------------------------------------------------------------------
# Pointwise GEMM (1x1 conv / Linear):  (M, K) @ (K, N) + b, tiled over M.
# --------------------------------------------------------------------------------------
def _gemm_bias_kernel(x_ref, w_ref, b_ref, o_ref):
    acc = jnp.dot(x_ref[...], w_ref[...], preferred_element_type=jnp.float32)
    o_ref[...] = (acc + b_ref[...]).astype(o_ref.dtype)


def linear_gemm(x2d, w, b, *, tile_m=512):
    m, k = x2d.shape
    n = w.shape[1]
    tm = min(tile_m, max(8, ((m + 7) // 8) * 8))
    mp = ((m + tm - 1) // tm) * tm
    if mp != m:
        x2d = jnp.pad(x2d, ((0, mp - m), (0, 0)))
    out = pl.pallas_call(
        _gemm_bias_kernel,
        out_shape=jax.ShapeDtypeStruct((mp, n), x2d.dtype),
        grid_spec=pltpu.PrefetchScalarGridSpec(
            num_scalar_prefetch=0,
            grid=(mp // tm,),
            in_specs=[
                pl.BlockSpec((tm, k), lambda i: (i, 0)),
                pl.BlockSpec((k, n), lambda i: (0, 0)),   # weights stay resident
                pl.BlockSpec((1, n), lambda i: (0, 0)),
            ],
            out_specs=pl.BlockSpec((tm, n), lambda i: (i, 0)),
        ),
        compiler_params=_compiler_params("parallel"),
    )(x2d, w, b.reshape(1, n))
    return out[:m] if mp != m else out


def conv1x1_nhwc(x, w_oihw, bias):
    n, h, w, cin = x.shape
    cout = w_oihw.shape[0]
    wm = w_oihw.reshape(cout, cin).T                      # (Cin, Cout)
    out = linear_gemm(x.reshape(n * h * w, cin), wm, bias)
    return out.reshape(n, h, w, cout)


# --------------------------------------------------------------------------------------
# Fused GroupNorm (+ optional SiLU), NHWC, one batch element per grid step.
# --------------------------------------------------------------------------------------
def _make_gn_kernel(inv_count, eps, do_silu):
    def kernel(x_ref, a_ref, gamma_ref, beta_ref, o_ref):
        x = x_ref[0].astype(jnp.float32)                  # (HW, C)
        a = a_ref[...]                                    # (C, C) block-diag ones (per group)
        gsum = jnp.sum(jnp.dot(x, a, preferred_element_type=jnp.float32),
                       axis=0, keepdims=True)             # per-group sums, broadcast per channel
        mean = gsum * inv_count                           # (1, C)
        d = x - mean
        gss = jnp.sum(jnp.dot(d * d, a, preferred_element_type=jnp.float32),
                      axis=0, keepdims=True)
        inv = lax.rsqrt(gss * inv_count + eps)
        y = d * inv * gamma_ref[...] + beta_ref[...]
        if do_silu:
            y = y / (1.0 + jnp.exp(-y))                   # SiLU
        o_ref[0] = y.astype(o_ref.dtype)
    return kernel


def groupnorm_nhwc(x, gamma, beta, *, num_groups=32, eps=1e-5, silu=False):
    n, h, w, c = x.shape
    assert c % num_groups == 0
    gs = c // num_groups
    hw = h * w
    xf = x.reshape(n, hw, c)
    # A[c1, c2] = 1 iff c1 and c2 are in the same group (contiguous grouping, like torch).
    a = jnp.kron(jnp.eye(num_groups, dtype=jnp.float32),
                 jnp.ones((gs, gs), dtype=jnp.float32))
    kernel = _make_gn_kernel(1.0 / float(hw * gs), eps, silu)
    out = pl.pallas_call(
        kernel,
        out_shape=jax.ShapeDtypeStruct((n, hw, c), x.dtype),
        grid_spec=pltpu.PrefetchScalarGridSpec(
            num_scalar_prefetch=0,
            grid=(n,),
            in_specs=[
                pl.BlockSpec((1, hw, c), lambda i: (i, 0, 0)),
                pl.BlockSpec((c, c), lambda i: (0, 0)),
                pl.BlockSpec((1, c), lambda i: (0, 0)),
                pl.BlockSpec((1, c), lambda i: (0, 0)),
            ],
            out_specs=pl.BlockSpec((1, hw, c), lambda i: (i, 0, 0)),
        ),
        compiler_params=_compiler_params("parallel"),
    )(xf, a, gamma.reshape(1, c), beta.reshape(1, c))
    return out.reshape(n, h, w, c)


# --------------------------------------------------------------------------------------
# 3x3 convolutions (NHWC).  Taps are built in-kernel from the VMEM-resident padded
# activation -> no im2col materialization / 9x HBM amplification.
# --------------------------------------------------------------------------------------
def _make_conv3x3_s1_kernel(ho, wo, cin, tco):
    def kernel(x_ref, w_ref, b_ref, o_ref):
        # x_ref: (1, ho+2, wo+2, cin)  w_ref: (9, cin, tco)  b_ref: (1, tco)
        acc = jnp.zeros((ho * wo, tco), jnp.float32)
        for kh in range(3):
            for kw in range(3):
                patch = x_ref[0, kh:kh + ho, kw:kw + wo, :].reshape(ho * wo, cin)
                acc = acc + jnp.dot(patch, w_ref[kh * 3 + kw],
                                    preferred_element_type=jnp.float32)
        o_ref[0] = (acc + b_ref[...]).astype(o_ref.dtype)   # lane-dense (HW, Cout-tile) slab
    return kernel


def conv3x3_s1_nhwc(x, w_oihw, bias):
    n, h, w, cin = x.shape
    cout = w_oihw.shape[0]
    xp = jnp.pad(x, ((0, 0), (1, 1), (1, 1), (0, 0)))
    wt = jnp.transpose(w_oihw, (2, 3, 1, 0)).reshape(9, cin, cout)   # (tap, Cin, Cout)
    tco = _pick_cout_tile(cout)
    kernel = _make_conv3x3_s1_kernel(h, w, cin, tco)
    out = pl.pallas_call(
        kernel,
        out_shape=jax.ShapeDtypeStruct((n, h * w, cout), x.dtype),
        grid_spec=pltpu.PrefetchScalarGridSpec(
            num_scalar_prefetch=0,
            grid=(n, cout // tco),
            in_specs=[
                pl.BlockSpec((1, h + 2, w + 2, cin), lambda i, j: (i, 0, 0, 0)),
                pl.BlockSpec((9, cin, tco), lambda i, j: (0, 0, j)),
                pl.BlockSpec((1, tco), lambda i, j: (0, j)),
            ],
            out_specs=pl.BlockSpec((1, h * w, tco), lambda i, j: (i, 0, j)),
        ),
        compiler_params=_compiler_params("parallel", "parallel"),
    )(xp, wt, bias.reshape(1, cout))
    return out.reshape(n, h, w, cout)


def _make_conv3x3_s2_kernel(ho, wo, cin, tco):
    def kernel(p00_ref, p01_ref, p10_ref, p11_ref, w_ref, b_ref, o_ref):
        phase = (p00_ref, p01_ref, p10_ref, p11_ref)       # row/col parity phases
        acc = jnp.zeros((ho * wo, tco), jnp.float32)
        for kh in range(3):
            for kw in range(3):
                pref = phase[(kh % 2) * 2 + (kw % 2)]
                rh, rw = kh // 2, kw // 2
                patch = pref[0, rh:rh + ho, rw:rw + wo, :].reshape(ho * wo, cin)
                acc = acc + jnp.dot(patch, w_ref[kh * 3 + kw],
                                    preferred_element_type=jnp.float32)
        o_ref[0] = (acc + b_ref[...]).astype(o_ref.dtype)
    return kernel


def conv3x3_s2_nhwc(x, w_oihw, bias):
    """Downsample: Conv2d(C, C, 3, stride=2, padding=1) in NHWC."""
    n, h, w, cin = x.shape
    assert h % 2 == 0 and w % 2 == 0, "stride-2 downsample expects even spatial dims"
    ho, wo = h // 2, w // 2
    cout = w_oihw.shape[0]
    xp = jnp.pad(x, ((0, 0), (1, 1), (1, 1), (0, 0)))
    # 4-way phase split (pure slicing, no duplication): every stride-2 tap becomes a
    # contiguous window of exactly one phase tensor.
    phases = [xp[:, r::2, c::2, :] for r in (0, 1) for c in (0, 1)]  # each (n, ho+1, wo+1, cin)
    wt = jnp.transpose(w_oihw, (2, 3, 1, 0)).reshape(9, cin, cout)
    tco = _pick_cout_tile(cout)
    kernel = _make_conv3x3_s2_kernel(ho, wo, cin, tco)
    phase_spec = pl.BlockSpec((1, ho + 1, wo + 1, cin), lambda i, j: (i, 0, 0, 0))
    out = pl.pallas_call(
        kernel,
        out_shape=jax.ShapeDtypeStruct((n, ho * wo, cout), x.dtype),
        grid_spec=pltpu.PrefetchScalarGridSpec(
            num_scalar_prefetch=0,
            grid=(n, cout // tco),
            in_specs=[phase_spec, phase_spec, phase_spec, phase_spec,
                      pl.BlockSpec((9, cin, tco), lambda i, j: (0, 0, j)),
                      pl.BlockSpec((1, tco), lambda i, j: (0, j))],
            out_specs=pl.BlockSpec((1, ho * wo, tco), lambda i, j: (i, 0, j)),
        ),
        compiler_params=_compiler_params("parallel", "parallel"),
    )(*phases, wt, bias.reshape(1, cout))
    return out.reshape(n, ho, wo, cout)


# --------------------------------------------------------------------------------------
# Attention core: per-batch softmax(Q K^T * scale) V.
# TODO(synk): for large H*W, switch to a flash-style key-tiled online-softmax variant.
# --------------------------------------------------------------------------------------
def _make_attn_kernel(scale):
    def kernel(q_ref, k_ref, v_ref, o_ref):
        q = q_ref[0].astype(jnp.float32)
        k = k_ref[0].astype(jnp.float32)
        v = v_ref[0].astype(jnp.float32)
        s = jnp.dot(q, k.T, preferred_element_type=jnp.float32) * scale
        s = s - jnp.max(s, axis=-1, keepdims=True)
        p = jnp.exp(s)
        p = p / jnp.sum(p, axis=-1, keepdims=True)
        o_ref[0] = jnp.dot(p, v, preferred_element_type=jnp.float32).astype(o_ref.dtype)
    return kernel


def attention_core(q, k, v, scale):
    n, hw, c = q.shape
    spec = pl.BlockSpec((1, hw, c), lambda i: (i, 0, 0))
    return pl.pallas_call(
        _make_attn_kernel(scale),
        out_shape=jax.ShapeDtypeStruct((n, hw, c), q.dtype),
        grid_spec=pltpu.PrefetchScalarGridSpec(
            num_scalar_prefetch=0, grid=(n,),
            in_specs=[spec, spec, spec],
            out_specs=spec,
        ),
        compiler_params=_compiler_params("parallel"),
    )(q, k, v)


# --------------------------------------------------------------------------------------
# DownBlock forward (NHWC internally, NCHW at the interface like PyTorch).
# --------------------------------------------------------------------------------------
def resblock_forward(p, x, t):
    h = groupnorm_nhwc(x, p["gn1_g"], p["gn1_b"], silu=True)
    h = conv3x3_s1_nhwc(h, p["w1"], p["b1"])
    temb = linear_gemm(jax.nn.silu(t), p["tw"], p["tb"])          # (N, Cout)
    h = h + temb[:, None, None, :]
    h = groupnorm_nhwc(h, p["gn2_g"], p["gn2_b"], silu=True)
    h = conv3x3_s1_nhwc(h, p["w2"], p["b2"])
    res = conv1x1_nhwc(x, p["rw"], p["rb"]) if "rw" in p else x
    return h + res


def attention_forward(p, x):
    n, h, w, c = x.shape
    xn = groupnorm_nhwc(x, p["gn_g"], p["gn_b"], silu=False)
    xf = xn.reshape(n * h * w, c)

    def proj(wc, bc):
        return linear_gemm(xf, wc.reshape(c, c).T, bc)

    q = proj(p["wq"], p["bq"]).reshape(n, h * w, c)
    k = proj(p["wk"], p["bk"]).reshape(n, h * w, c)
    v = proj(p["wv"], p["bv"]).reshape(n, h * w, c)
    o = attention_core(q, k, v, float(c) ** -0.5)
    o = conv1x1_nhwc(o.reshape(n, h, w, c), p["wp"], p["bp"])
    return x + o


def downblock_forward(params, x_nchw, t, use_attn):
    x = jnp.transpose(x_nchw, (0, 2, 3, 1))                       # NCHW -> NHWC once
    skips = []
    for rp in params["res"]:
        x = resblock_forward(rp, x, t)
        skips.append(x)
    if use_attn:
        x = attention_forward(params["attn"], x)
    xd = conv3x3_s2_nhwc(x, params["down_w"], params["down_b"])
    to_nchw = lambda a: jnp.transpose(a, (0, 3, 1, 2))            # back to NCHW at exit
    return to_nchw(xd), [to_nchw(s) for s in skips]


# --------------------------------------------------------------------------------------
# Parameter init (PyTorch-style) and pure-JAX reference for the correctness check.
# --------------------------------------------------------------------------------------
def init_downblock_params(key, in_ch, out_ch, t_dim, num_res_blocks, use_attn):
    def uni(k, shape, fan_in):
        b = 1.0 / math.sqrt(fan_in)
        return jax.random.uniform(k, shape, minval=-b, maxval=b, dtype=jnp.float32)

    def gn(k, c):
        k1, k2 = jax.random.split(k)
        return (1.0 + 0.1 * jax.random.normal(k1, (c,), jnp.float32),
                0.1 * jax.random.normal(k2, (c,), jnp.float32))

    keys = jax.random.split(key, num_res_blocks + 2)
    res = []
    for i in range(num_res_blocks):
        cin = in_ch if i == 0 else out_ch
        ks = jax.random.split(keys[i], 10)
        p = {}
        p["gn1_g"], p["gn1_b"] = gn(ks[0], cin)
        p["w1"] = uni(ks[1], (out_ch, cin, 3, 3), cin * 9)
        p["b1"] = uni(ks[2], (out_ch,), cin * 9)
        p["tw"] = uni(ks[3], (t_dim, out_ch), t_dim)
        p["tb"] = uni(ks[4], (out_ch,), t_dim)
        p["gn2_g"], p["gn2_b"] = gn(ks[5], out_ch)
        p["w2"] = uni(ks[6], (out_ch, out_ch, 3, 3), out_ch * 9)
        p["b2"] = uni(ks[7], (out_ch,), out_ch * 9)
        if cin != out_ch:
            p["rw"] = uni(ks[8], (out_ch, cin, 1, 1), cin)
            p["rb"] = uni(ks[9], (out_ch,), cin)
        res.append(p)
    params = {"res": res}
    if use_attn:
        ks = jax.random.split(keys[num_res_blocks], 10)
        a = {}
        a["gn_g"], a["gn_b"] = gn(ks[0], out_ch)
        for name, (iw, ib) in zip("qkvp", [(1, 2), (3, 4), (5, 6), (7, 8)]):
            a["w" + name] = uni(ks[iw], (out_ch, out_ch, 1, 1), out_ch)
            a["b" + name] = uni(ks[ib], (out_ch,), out_ch)
        params["attn"] = a
    kd = jax.random.split(keys[num_res_blocks + 1], 2)
    params["down_w"] = uni(kd[0], (out_ch, out_ch, 3, 3), out_ch * 9)
    params["down_b"] = uni(kd[1], (out_ch,), out_ch * 9)
    return params


def _ref_groupnorm(x, gamma, beta, num_groups=32, eps=1e-5):
    n, c, h, w = x.shape
    xg = x.reshape(n, num_groups, c // num_groups, h, w)
    mean = jnp.mean(xg, axis=(2, 3, 4), keepdims=True)
    var = jnp.var(xg, axis=(2, 3, 4), keepdims=True)
    xn = ((xg - mean) / jnp.sqrt(var + eps)).reshape(n, c, h, w)
    return xn * gamma.reshape(1, c, 1, 1) + beta.reshape(1, c, 1, 1)


def _ref_conv(x, w, b, stride, pad):
    y = lax.conv_general_dilated(x, w, (stride, stride), ((pad, pad), (pad, pad)),
                                 dimension_numbers=("NCHW", "OIHW", "NCHW"))
    return y + b.reshape(1, -1, 1, 1)


def _ref_resblock(p, x, t):
    h = jax.nn.silu(_ref_groupnorm(x, p["gn1_g"], p["gn1_b"]))
    h = _ref_conv(h, p["w1"], p["b1"], 1, 1)
    temb = jax.nn.silu(t) @ p["tw"] + p["tb"]
    h = h + temb[:, :, None, None]
    h = jax.nn.silu(_ref_groupnorm(h, p["gn2_g"], p["gn2_b"]))
    h = _ref_conv(h, p["w2"], p["b2"], 1, 1)
    res = _ref_conv(x, p["rw"], p["rb"], 1, 0) if "rw" in p else x
    return h + res


def _ref_attention(p, x):
    n, c, h, w = x.shape
    xn = _ref_groupnorm(x, p["gn_g"], p["gn_b"])
    q = _ref_conv(xn, p["wq"], p["bq"], 1, 0).reshape(n, c, h * w).transpose(0, 2, 1)
    k = _ref_conv(xn, p["wk"], p["bk"], 1, 0).reshape(n, c, h * w)
    v = _ref_conv(xn, p["wv"], p["bv"], 1, 0).reshape(n, c, h * w).transpose(0, 2, 1)
    attn = jnp.einsum("bqc,bck->bqk", q, k) * (c ** -0.5)
    attn = jax.nn.softmax(attn, axis=-1)
    out = jnp.einsum("bqk,bkc->bqc", attn, v).transpose(0, 2, 1).reshape(n, c, h, w)
    return x + _ref_conv(out, p["wp"], p["bp"], 1, 0)


def _ref_downblock(params, x, t, use_attn):
    skips = []
    for rp in params["res"]:
        x = _ref_resblock(rp, x, t)
        skips.append(x)
    if use_attn:
        x = _ref_attention(params["attn"], x)
    xd = _ref_conv(x, params["down_w"], params["down_b"], 2, 1)
    return xd, skips


if __name__ == "__main__":
    key = jax.random.PRNGKey(0)
    k_x, k_t, k_p = jax.random.split(key, 3)

    N, IN_CH, OUT_CH, H, W = 2, 32, 64, 16, 16   # GroupNorm(32, C) needs C % 32 == 0
    T_DIM, NUM_RES_BLOCKS, USE_ATTN = 32, 2, True

    x = jax.random.normal(k_x, (N, IN_CH, H, W), dtype=jnp.float32)
    t = jax.random.normal(k_t, (N, T_DIM), dtype=jnp.float32)
    params = init_downblock_params(k_p, IN_CH, OUT_CH, T_DIM, NUM_RES_BLOCKS, USE_ATTN)

    x_down, skips = downblock_forward(params, x, t, USE_ATTN)
    x_down = jax.block_until_ready(x_down)
    skips = [jax.block_until_ready(s) for s in skips]

    with jax.default_matmul_precision("highest"):
        ref_down, ref_skips = _ref_downblock(params, x, t, USE_ATTN)

    assert x_down.shape == (N, OUT_CH, H // 2, W // 2), x_down.shape
    assert len(skips) == NUM_RES_BLOCKS
    assert all(s.shape == (N, OUT_CH, H, W) for s in skips)
    assert jnp.allclose(x_down, ref_down, atol=1e-3, rtol=1e-3), \
        float(jnp.max(jnp.abs(x_down - ref_down)))
    for s, rs in zip(skips, ref_skips):
        assert jnp.allclose(s, rs, atol=1e-3, rtol=1e-3), \
            float(jnp.max(jnp.abs(s - rs)))

    print("KERNEL_OK")
</pallas_src>

<mosaic_0001>
module attributes {stable_mosaic.version = 11 : i64} {
  func.func @kernel(%arg0: i32, %arg1: memref<1x256x32xf32, #tpu.memory_space<vmem>>, %arg2: memref<32x32xf32, #tpu.memory_space<vmem>>, %arg3: memref<1x32xf32, #tpu.memory_space<vmem>>, %arg4: memref<1x32xf32, #tpu.memory_space<vmem>>, %arg5: memref<1x256x32xf32, #tpu.memory_space<vmem>>) attributes {dimension_semantics = [#tpu.dimension_semantics<parallel>], iteration_bounds = array<i64: 2>, scalar_prefetch = 0 : i64, scratch_operands = 0 : i64, tpu.core_type = #tpu.core_type<tc>, window_params = [{transform_indices = @transform_0, window_bounds = array<i64: 1, 256, 32>}, {pipeline_mode = #tpu.pipeline_mode<synchronous>, transform_indices = @transform_1, window_bounds = array<i64: 32, 32>}, {pipeline_mode = #tpu.pipeline_mode<synchronous>, transform_indices = @transform_2, window_bounds = array<i64: 1, 32>}, {pipeline_mode = #tpu.pipeline_mode<synchronous>, transform_indices = @transform_3, window_bounds = array<i64: 1, 32>}, {transform_indices = @transform_4, window_bounds = array<i64: 1, 256, 32>}]} {
    %c0 = arith.constant 0 : index
    %c0_0 = arith.constant 0 : index
    %c0_1 = arith.constant 0 : index
    %0 = vector.load %arg1[%c0, %c0_0, %c0_1] : memref<1x256x32xf32, #tpu.memory_space<vmem>>, vector<1x256x32xf32>
    %1 = vector.shape_cast %0 : vector<1x256x32xf32> to vector<256x32xf32>
    %c0_2 = arith.constant 0 : index
    %c0_3 = arith.constant 0 : index
    %2 = vector.load %arg2[%c0_2, %c0_3] : memref<32x32xf32, #tpu.memory_space<vmem>>, vector<32x32xf32>
    %cst = arith.constant dense<0.000000e+00> : vector<256x32xf32>
    %3 = tpu.matmul %1, %2, %cst {dimension_numbers = #tpu.dot_dimension_numbers<[1], [0], [0], [1], [0, 0, 1, 1], [], []>} : vector<256x32xf32>, vector<32x32xf32>, vector<256x32xf32> -> vector<256x32xf32>
    %cst_4 = arith.constant dense<0.000000e+00> : vector<32xf32>
    %4 = vector.multi_reduction <add>, %3, %cst_4 [0] : vector<256x32xf32> to vector<32xf32>
    %5 = vector.shape_cast %4 : vector<32xf32> to vector<1x32xf32>
    %cst_5 = arith.constant 3.906250e-03 : f32
    %6 = vector.broadcast %cst_5 : f32 to vector<1x32xf32>
    %7 = arith.mulf %5, %6 : vector<1x32xf32>
    %8 = vector.broadcast %7 : vector<1x32xf32> to vector<256x32xf32>
    %9 = arith.subf %1, %8 : vector<256x32xf32>
    %10 = arith.mulf %9, %9 : vector<256x32xf32>
    %cst_6 = arith.constant dense<0.000000e+00> : vector<256x32xf32>
    %11 = tpu.matmul %10, %2, %cst_6 {dimension_numbers = #tpu.dot_dimension_numbers<[1], [0], [0], [1], [0, 0, 1, 1], [], []>} : vector<256x32xf32>, vector<32x32xf32>, vector<256x32xf32> -> vector<256x32xf32>
    %cst_7 = arith.constant dense<0.000000e+00> : vector<32xf32>
    %12 = vector.multi_reduction <add>, %11, %cst_7 [0] : vector<256x32xf32> to vector<32xf32>
    %13 = vector.shape_cast %12 : vector<32xf32> to vector<1x32xf32>
    %cst_8 = arith.constant 3.906250e-03 : f32
    %14 = vector.broadcast %cst_8 : f32 to vector<1x32xf32>
    %15 = arith.mulf %13, %14 : vector<1x32xf32>
    %cst_9 = arith.constant 9.99999974E-6 : f32
    %16 = vector.broadcast %cst_9 : f32 to vector<1x32xf32>
    %17 = arith.addf %15, %16 : vector<1x32xf32>
    %18 = math.rsqrt %17 : vector<1x32xf32>
    %19 = vector.broadcast %18 : vector<1x32xf32> to vector<256x32xf32>
    %20 = arith.mulf %9, %19 : vector<256x32xf32>
    %c0_10 = arith.constant 0 : index
    %c0_11 = arith.constant 0 : index
    %21 = vector.load %arg3[%c0_10, %c0_11] : memref<1x32xf32, #tpu.memory_space<vmem>>, vector<1x32xf32>
    %22 = vector.broadcast %21 : vector<1x32xf32> to vector<256x32xf32>
    %23 = arith.mulf %20, %22 : vector<256x32xf32>
    %c0_12 = arith.constant 0 : index
    %c0_13 = arith.constant 0 : index
    %24 = vector.load %arg4[%c0_12, %c0_13] : memref<1x32xf32, #tpu.memory_space<vmem>>, vector<1x32xf32>
    %25 = vector.broadcast %24 : vector<1x32xf32> to vector<256x32xf32>
    %26 = arith.addf %23, %25 : vector<256x32xf32>
    %cst_14 = arith.constant 0.000000e+00 : f32
    %27 = vector.broadcast %cst_14 : f32 to vector<256x32xf32>
    %28 = arith.subf %27, %26 : vector<256x32xf32>
    %29 = math.exp %28 : vector<256x32xf32>
    %cst_15 = arith.constant 1.000000e+00 : f32
    %30 = vector.broadcast %cst_15 : f32 to vector<256x32xf32>
    %31 = arith.addf %30, %29 : vector<256x32xf32>
    %32 = arith.divf %26, %31 : vector<256x32xf32>
    %c0_16 = arith.constant 0 : index
    %c0_17 = arith.constant 0 : index
    %c0_18 = arith.constant 0 : index
    %33 = vector.load %arg5[%c0_16, %c0_17, %c0_18] : memref<1x256x32xf32, #tpu.memory_space<vmem>>, vector<1x256x32xf32>
    %34 = vector.shape_cast %33 : vector<1x256x32xf32> to vector<256x32xf32>
    %35 = vector.shape_cast %32 : vector<256x32xf32> to vector<1x256x32xf32>
    tpu.vector_store %arg5[%c0_16, %c0_17, %c0_18], %35 {strides = array<i32>} : memref<1x256x32xf32, #tpu.memory_space<vmem>>, vector<1x256x32xf32>,
    return
  }
  func.func @transform_0(%arg0: i32) -> (i32, i32, i32) {
    %c0_i32 = arith.constant 0 : i32
    %c0_i32_0 = arith.constant 0 : i32
    %c0_i32_1 = arith.constant 0 : i32
    return %arg0, %c0_i32, %c0_i32_0 : i32, i32, i32
  }
  func.func @transform_1(%arg0: i32) -> (i32, i32) {
    %c0_i32 = arith.constant 0 : i32
    %c0_i32_0 = arith.constant 0 : i32
    %c0_i32_1 = arith.constant 0 : i32
    return %c0_i32, %c0_i32_0 : i32, i32
  }
  func.func @transform_2(%arg0: i32) -> (i32, i32) {
    %c0_i32 = arith.constant 0 : i32
    %c0_i32_0 = arith.constant 0 : i32
    %c0_i32_1 = arith.constant 0 : i32
    return %c0_i32, %c0_i32_0 : i32, i32
  }
  func.func @transform_3(%arg0: i32) -> (i32, i32) {
    %c0_i32 = arith.constant 0 : i32
    %c0_i32_0 = arith.constant 0 : i32
    %c0_i32_1 = arith.constant 0 : i32
    return %c0_i32, %c0_i32_0 : i32, i32
  }
  func.func @transform_4(%arg0: i32) -> (i32, i32, i32) {
    %c0_i32 = arith.constant 0 : i32
    %c0_i32_0 = arith.constant 0 : i32
    %c0_i32_1 = arith.constant 0 : i32
    return %arg0, %c0_i32, %c0_i32_0 : i32, i32, i32
  }
}

</mosaic_0001>

<bundles_post_ra>
// kernel: tpu_custom_call.1
= control target key start
LH: loop header
LB: loop body
LE: loop exit
PB: predicated region body
PF: predicated region fallthrough
CT: control target
= control target key end

     0   :  { %9 = vsyncpa [#allocation3], 0  ;;  %s3427_s0 = inlined_call_operand.hbm [shape: f32[2,256,32], index: 0, kind: input, shape index: {}]   ;;  %s3428_s1 = inlined_call_operand.hbm [shape: f32[32,32], index: 1, kind: input, shape index: {}]   ;;  %s3429_s2 = inlined_call_operand.hbm [shape: f32[1,32], index: 2, kind: input, shape index: {}]   ;;  %s3430_s3 = inlined_call_operand.hbm [shape: f32[1,32], index: 3, kind: input, shape index: {}]   ;;  %s3431_s4 = inlined_call_operand.hbm [shape: f32[2,256,32], index: 4, kind: output, shape index: {}]  }
   0x1   :  { %11 = vsyncpa [#allocation3 + $0x1], 0 }
   0x2   :  { %12 = vsyncpa [#allocation6], 0 }
   0x3   :  { %13 = vsyncpa [#allocation9], 0 }
   0x4   :  { %14 = vsyncpa [#allocation4], 0 }
   0x5   :  { %16 = vsyncpa [#allocation4 + $0x1], 0  ;;  %s2314_s15 = smov 0   ;;  %s2316_s16 = smov 0  }
   0x6   :  { %s2318_s17 = smov 0   ;;  %s2320_s18 = smov 0  }
   0x7 LB: > { %s2335_s19 = sadd.s32 4294967295, %s2278_s18   ;;  %s1591_s20 = sadd.s32 4294967294, %s2278_s18   ;;  %s2278_s18 = sphi %s2320_s18, %s3463_s18   ;;  %s2274_s17 = sphi %s2318_s17, %s3462_s17   ;;  %s2270_s16 = sphi %s2316_s16, %s3461_s16   ;;  %s2266_s15 = sphi %s2314_s15, %s3460_s15  }
   0x8   : > { %p42_p0 = scmp.ne.s32.totalorder %s2270_s16, %s2266_s15  ;;  %p3432_p1 = scmp.eq.s32.totalorder %s2335_s19, 0 }
   0x9   : > { %p135_p3 = scmp.eq.s32.totalorder %s1591_s20, 1  ;;  %p1592_p5 = scmp.ge.s32.totalorder %s2278_s18, 1 }
   0xa   : > { %p2344_p4 = por %p3432_p1, %p42_p0  ;;  %p142_p7 = scmp.lt.s32.totalorder %s2278_s18, 3 }
   0xb   : > { %p2349_p6 = por %p135_p3, %p42_p0  ;;  %s2280_s24 = smov [#allocation5]  }
   0xc   : > { %s3438_s21 = scalar_select %p2344_p4, 1, 0 }
   0xd   : > { %s3439_s22 = scalar_select %p2349_p6, 1, 0 }
   0xe   : > { %p2354_p8 = pnand %p1592_p5, %p142_p7  ;;  %s154_s25 = sshll.u32 %s2280_s24, 4  ;;  %s2358_s25 = int_to_ptr.vmem [resolvable:$true] %s154_s25 }
   0xf   : > { %s2281_s27 = smov [#allocation7]   ;;  %s2282_s29 = smov [#allocation8]  }
  0x10   : > { %s3440_s23 = scalar_select %p2354_p8, 1, 0 }
  0x11   : > { %p1895_p9 = pneg %p2354_p8  ;;  %s168_s28 = sshll.u32 %s2281_s27, 4  ;;  %s2369_s28 = int_to_ptr.vmem [resolvable:$true] %s168_s28 }
  0x12   : > { %s2371_s30 = sshll.u32 %s2282_s29, 4  ;;  %s2090_s7 = scalar_lea.hbm %s3428_s1, 512  ;;  %s180_s30 = int_to_ptr.vmem [resolvable:$true] %s2371_s30 }
  0x13   : > { %p2365_p11 = pnand %p1895_p9, %p3432_p1  ;;  %p2091_p12 = scmp.ne.s32.totalorder %s3428_s1, %s2090_s7 }
  0x14   : > { %p2097_p5 = scmp.lt.u32.totalorder %s2090_s7, %s3428_s1 }
  0x15   : > { %p2381_p13 = pneg %p2365_p11 }
  0x17   : > { %p2093_p0 = pnand %p2381_p13, %p2091_p12 }
  0x19   : > { %p2094_p3 = pneg %p2093_p0 }
  0x1b   : > { %p2099_p7 = pnand %p2097_p5, %p2094_p3 }
  0x1d   : > { %2102 = shalt.err (!%p2099_p7)
}
  0x1e   : > { %s2103_s13 = scalar_lea.vmem %s2358_s25, 512  ;;  %p2111_p2 = scmp.lt.s32.totalorder %s2358_s25, %s2358_s25 }
  0x1f   : > { %p2104_p9 = scmp.ne.s32.totalorder %s2358_s25, %s2103_s13  ;;  %p2112_p6 = scmp.lt.s32.totalorder %s2103_s13, %s2103_s13 }
  0x21   : > { %p2106_p10 = pnand %p2104_p9, %p2381_p13  ;;  %p2113_p12 = por %p2112_p6, %p2111_p2 }
  0x23   : > { %p2107_p1 = pneg %p2106_p10 }
  0x25   : > { %p2114_p0 = pnand %p2113_p12, %p2107_p1 }
  0x27   : > { %2117 = shalt.err (!%p2114_p0)
}
  0x28   : > { %s2283_s14 = smov 128   ;;  %s2284_s20 = smov 8  }
  0x29   : > { %1898 = dma.hbm_to_vmem [thread:$0]  (!%p2365_p11), %s3428_s1, 512, %s2358_s25, [#allocation6], %s2283_s14, %s2283_s14, %s2284_s20  }
  0x2a   : > { %s2118_s6 = scalar_lea.hbm %s3429_s2, 16 }
  0x2b   : > { %p2119_p1 = scmp.ne.s32.totalorder %s3429_s2, %s2118_s6  ;;  %p2125_p10 = scmp.lt.u32.totalorder %s2118_s6, %s3429_s2 }
  0x2d   : > { %p2121_p2 = pnand %p2119_p1, %p2381_p13 }
  0x2f   : > { %p2122_p6 = pneg %p2121_p2 }
  0x31   : > { %p2127_p3 = pnand %p2125_p10, %p2122_p6 }
  0x33   : > { %2130 = shalt.err (!%p2127_p3)
}
  0x34   : > { %s2131_s25 = scalar_lea.vmem %s2369_s28, 16  ;;  %s2138_s12 = scalar_lea.vmem %s2369_s28, 32 }
  0x35   : > { %p2132_p5 = scmp.ne.s32.totalorder %s2369_s28, %s2131_s25  ;;  %p2139_p12 = scmp.lt.s32.totalorder %s2369_s28, %s2369_s28 }
  0x36   : > { %p2140_p0 = scmp.lt.s32.totalorder %s2138_s12, %s2131_s25 }
  0x37   : > { %p2134_p7 = pnand %p2132_p5, %p2381_p13 }
  0x38   : > { %p2141_p1 = por %p2140_p0, %p2139_p12 }
  0x39   : > { %p2135_p9 = pneg %p2134_p7 }
  0x3b   : > { %p2142_p2 = pnand %p2141_p1, %p2135_p9 }
  0x3d   : > { %2145 = shalt.err (!%p2142_p2)
}
  0x3e   : > { %1901 = dma.hbm_to_vmem [thread:$0]  (!%p2365_p11), %s3429_s2, 16, %s2369_s28, [#allocation6]  }
  0x3f   : > { %s2146_s5 = scalar_lea.hbm %s3430_s3, 16 }
  0x40   : > { %p2147_p6 = scmp.ne.s32.totalorder %s3430_s3, %s2146_s5  ;;  %p2153_p5 = scmp.lt.u32.totalorder %s2146_s5, %s3430_s3 }
  0x42   : > { %p2149_p10 = pnand %p2147_p6, %p2381_p13 }
  0x44   : > { %p2150_p3 = pneg %p2149_p10 }
  0x46   : > { %p2155_p7 = pnand %p2153_p5, %p2150_p3 }
  0x48   : > { %2158 = shalt.err (!%p2155_p7)
}
  0x49   : > { %s2159_s11 = scalar_lea.vmem %s180_s30, 16  ;;  %s2166_s28 = scalar_lea.vmem %s180_s30, 32 }
  0x4a   : > { %p2160_p9 = scmp.ne.s32.totalorder %s180_s30, %s2159_s11  ;;  %p2167_p1 = scmp.lt.s32.totalorder %s180_s30, %s180_s30 }
  0x4b   : > { %p2168_p2 = scmp.lt.s32.totalorder %s2166_s28, %s2159_s11 }
  0x4c   : > { %p2162_p12 = pnand %p2160_p9, %p2381_p13 }
  0x4d   : > { %p2169_p4 = por %p2168_p2, %p2167_p1 }
  0x4e   : > { %p2163_p0 = pneg %p2162_p12 }
  0x50   : > { %p2170_p8 = pnand %p2169_p4, %p2163_p0 }
  0x52   : > { %2173 = shalt.err (!%p2170_p8)
}
  0x53   : > { %1904 = dma.hbm_to_vmem [thread:$0]  (!%p2365_p11), %s3430_s3, 16, %s180_s30, [#allocation9]  }
  0x54   : > { %s2449_s10 = sadd.s32 1, %s2278_s18   ;;  %s29_s26 = sadd.s32 1, %s2274_s17 }
  0x55   : > { %s26_s13 = ssub.s32 %s2278_s18, %s2449_s10  ;;  %p36_p8 = scmp.ne.s32.totalorder %s2274_s17, %s2270_s16 }
  0x56   : > { %p27_p4 = scmp.eq.s32.totalorder %s26_s13, 0  ;;  %p37_p13 = scmp.eq.s32.totalorder %s2278_s18, 0 }
  0x57   : > { %p1916_p6 = scmp.lt.s32.totalorder %s2278_s18, 2  ;;  %p3443_p3 = scmp.eq.s32.totalorder %s2335_s19, 1 }
  0x58   : > { %s2459_s24 = scalar_select %p27_p4, %s2274_s17, %s29_s26  }
  0x59   : > { %p38_p10 = por %p37_p13, %p36_p8  ;;  %p2463_p5 = por %p3443_p3, %p36_p8 }
  0x5a   : > { %s190_s29 = sand.u32 1, %s2274_s17   ;;  %s1677_s5 = sshll.u32 %s2278_s18, 12 }
  0x5b   : > { %s1597_s30 = sshll.u32 %s190_s29, 8  ;;  %s2472_s8 = scalar_lea.hbm %s3427_s0, %s1677_s5 }
  0x5c   : > { %s194_s9 = scalar_lea.vmem [#allocation2], %s1597_s30  ;;  %p2474_p11 = pnand %p1916_p6, %p38_p10 }
  0x5d   : > { %s201_s11 = sshll.u32 %s194_s9, 4  ;;  %s2480_s25 = scalar_lea.sflag [#allocation3], %s190_s29  ;;  %s2478_s11 = int_to_ptr.vmem [resolvable:$true] %s201_s11 }
  0x5e   : > { %s2174_s12 = scalar_lea.hbm %s2472_s8, 4096  ;;  %p2176_p9 = pneg %p2474_p11 }
  0x5f   : > { %p2175_p7 = scmp.ne.s32.totalorder %s2472_s8, %s2174_s12  ;;  %s2179_s5 = scalar_lea.hbm %s3427_s0, 8192 }
  0x60   : > { %p2180_p1 = scmp.lt.u32.totalorder %s2472_s8, %s3427_s0  ;;  %p2181_p2 = scmp.lt.u32.totalorder %s2179_s5, %s2174_s12 }
  0x61   : > { %p2177_p12 = pnand %p2176_p9, %p2175_p7  ;;  %p2183_p8 = scmp.lt.u32.totalorder %s2174_s12, %s2472_s8 }
  0x62   : > { %p2182_p4 = por %p2181_p2, %p2180_p1 }
  0x63   : > { %p2178_p0 = pneg %p2177_p12 }
  0x64   : > { %p2184_p13 = por %p2183_p8, %p2182_p4 }
  0x66   : > { %p2185_p6 = pnand %p2184_p13, %p2178_p0 }
  0x68   : > { %2188 = shalt.err (!%p2185_p6)
}
  0x69   : > { %s2189_s29 = scalar_lea.vmem %s2478_s11, 4096  ;;  %s2285_s7 = smov [#allocation2]  }
  0x6a   : > { %p2190_p10 = scmp.ne.s32.totalorder %s2478_s11, %s2189_s29  ;;  %s2194_s9 = sshll.u32 %s2285_s7, 4  ;;  %s2195_s9 = int_to_ptr.vmem [resolvable:$false] %s2194_s9 }
  0x6b   : > { %s2196_s13 = scalar_lea.vmem %s2195_s9, 8192  ;;  %p2197_p12 = scmp.lt.s32.totalorder %s2478_s11, %s2195_s9 }
  0x6c   : > { %p2192_p3 = pnand %p2190_p10, %p2176_p9  ;;  %p2198_p1 = scmp.lt.s32.totalorder %s2196_s13, %s2189_s29 }
  0x6e   : > { %p2193_p7 = pneg %p2192_p3  ;;  %p2199_p2 = por %p2198_p1, %p2197_p12 }
  0x70   : > { %p2200_p4 = pnand %p2199_p2, %p2193_p7 }
  0x72   : > { %2203 = shalt.err (!%p2200_p4)
}
  0x73   : > { %1908 = dma.hbm_to_vmem [thread:$0]  (!%p2474_p11), %s2472_s8, 4096, %s2478_s11, %s2480_s25, %s2283_s14, %s2283_s14, %s2284_s20  }
  0x74   : > { %p3446_p9 = scmp.ne.s32.totalorder %s3440_s23, 0 }
  0x76   : > { %213 = sbr.rel (%p3446_p9) target bundleno = 862 (0x35e), region = 36 }
  0x7d   : > { %s2514_s12 = sand.u32 1, %s2270_s16   ;;  %p3447_p0 = scmp.ne.s32.totalorder %s3438_s21, 0 }
  0x7e   : > { %s1601_s26 = sshll.u32 %s2514_s12, 8  ;;  %s216_s5 = scalar_lea.sflag [#allocation3], %s2514_s12 }
  0x7f   : > { %s2520_s28 = scalar_lea.vmem [#allocation2], %s1601_s26 }
  0x80   : > { %2249 = dma.done.wait (%p3447_p0), %s216_s5, 4096  }
  0x81   : > { %2251 = vsyncadd (%p3447_p0), %s216_s5, 4294963200  ;;  %p3448_p11 = scmp.eq.s32.totalorder %s2335_s19, 0 }
  0x83   : > { %2253 = dma.done.wait (%p3448_p11), [#allocation6], 528   ;;  %p3449_p8 = pmov %p3448_p11 }
  0x85   : > { %2255 = vsyncadd (%p3449_p8), [#allocation6], 4294966768  ;;  %p3450_p13 = pmov %p3449_p8 }
  0x86   : > { %p3451_p6 = pmov %p3449_p8 }
  0x87   : > { %2257 = dma.done.wait (%p3450_p13), [#allocation9], 16  }
  0x88   : > { %2259 = vsyncadd (%p3451_p6), [#allocation9], 4294967280  ;;  %vm292_vm0 = vcmask 261120   ;;  %v288_v0 = vld [vmem:[#allocation5] sm:$0xff]  ;;  %v289_v1 = vld [vmem:[#allocation5 + $0x8] sm:$0xff]  ;;  %s3269_s21 = scalar_lea.vmem [#allocation10], %s1601_s26 }
  0x89   : > { %v290_v2 = vld [vmem:[#allocation5 + $0x10] sm:$0xff]  ;;  %v1863_v3 = vpack.c.bf16 %v289_v1, %v288_v0  ;;  %v291_v4 = vld [vmem:[#allocation5 + $0x18] sm:$0xff]  ;;  %v2535_v5 = vld [vmem:[%s2520_s28] sm:$0xff]  ;;  %s1678_s23 = sshll.u32 %s2335_s19, 12  ;;  %s1489_s14 = sshll.u32 %s3269_s21, 4  ;;  %s3376_s14 = int_to_ptr.vmem [resolvable:$true] %s1489_s14 }
  0x8a   : > { %v1867_v6 = vpack.c.bf16 %v291_v4, %v290_v2  ;;  %1759 = vmatprep.mubr.msk.f32.mxu0 %vm292_vm0, %v2535_v5  ;;  %v2540_v7 = vld [vmem:[%s2520_s28 + $0x8] sm:$0xff]  ;;  %v2543_v8 = vld [vmem:[%s2520_s28 + $0x10] sm:$0xff]  ;;  %v2550_v9 = vld [vmem:[%s2520_s28 + $0x18] sm:$0xff]  ;;  %s3374_s8 = scalar_lea.hbm %s3431_s4, %s1678_s23  ;;  %s1476_s11 = scalar_lea.sflag [#allocation4], %s2514_s12 }
  0x8b   : > { %1864 = vmatprep.subr.bf16.mxu0 %v1863_v3  ;;  %1872 = vmatprep.subr.bf16.mxu1 %v1863_v3  ;;  %v2553_v10 = vld [vmem:[%s2520_s28 + $0x20] sm:$0xff]  ;;  %v2560_v11 = vld [vmem:[%s2520_s28 + $0x28] sm:$0xff]  ;;  %v2563_v12 = vld [vmem:[%s2520_s28 + $0x30] sm:$0xff]  ;;  %s2204_s25 = scalar_lea.vmem %s3376_s14, 4096  ;;  %s2286_s30 = smov [#allocation10]  }
  0x8c   : > { %1866 = vmatpush3.bf16.msra.mxu0 %v1863_v3  ;;  %1874 = vmatpush3.bf16.msra.mxu1 %v1863_v3  ;;  %v2570_v13 = vld [vmem:[%s2520_s28 + $0x38] sm:$0xff]  ;;  %v2573_v14 = vld [vmem:[%s2520_s28 + $0x40] sm:$0xff]  ;;  %v2580_v15 = vld [vmem:[%s2520_s28 + $0x48] sm:$0xff]  ;;  %p2205_p10 = scmp.ne.s32.totalorder %s3376_s14, %s2204_s25  ;;  %s2208_s6 = sshll.u32 %s2286_s30, 4  ;;  %s2209_s6 = int_to_ptr.vmem [resolvable:$false] %s2208_s6 }
  0x8d   : > { %1868 = vmatprep.subr.bf16.mxu0 %v1867_v6  ;;  %1876 = vmatprep.subr.bf16.mxu1 %v1867_v6  ;;  %v2583_v16 = vld [vmem:[%s2520_s28 + $0x50] sm:$0xff]  ;;  %v2590_v17 = vld [vmem:[%s2520_s28 + $0x58] sm:$0xff]  ;;  %v2593_v18 = vld [vmem:[%s2520_s28 + $0x60] sm:$0xff]  ;;  %s2210_s29 = scalar_lea.vmem %s2209_s6, 8192  ;;  %p2211_p12 = scmp.lt.s32.totalorder %s3376_s14, %s2209_s6 }
  0x8e   : > { %v2600_v19 = vld [vmem:[%s2520_s28 + $0x68] sm:$0xff]  ;;  %v2603_v20 = vld [vmem:[%s2520_s28 + $0x70] sm:$0xff]  ;;  %v2610_v21 = vld [vmem:[%s2520_s28 + $0x78] sm:$0xff]  ;;  %p2206_p3 = pnand %p2205_p10, %p2463_p5  ;;  %p2212_p1 = scmp.lt.s32.totalorder %s2210_s29, %s2204_s25 }
  0x8f   : > { %v2613_v22 = vld [vmem:[%s2520_s28 + $0x80] sm:$0xff]  ;;  %v2620_v23 = vld [vmem:[%s2520_s28 + $0x88] sm:$0xff]  ;;  %v2623_v24 = vld [vmem:[%s2520_s28 + $0x90] sm:$0xff] }
  0x90   : > { %1870 = vmatpush3.bf16.msra.mxu0 %v1867_v6  ;;  %1878 = vmatpush3.bf16.msra.mxu1 %v1867_v6  ;;  %v2630_v25 = vld [vmem:[%s2520_s28 + $0x98] sm:$0xff]  ;;  %v2633_v26 = vld [vmem:[%s2520_s28 + $0xa0] sm:$0xff]  ;;  %v2640_v27 = vld [vmem:[%s2520_s28 + $0xa8] sm:$0xff]  ;;  %p2207_p7 = pneg %p2206_p3  ;;  %p2213_p2 = por %p2212_p1, %p2211_p12 }
  0x91   : > { %v2643_v28 = vld [vmem:[%s2520_s28 + $0xb0] sm:$0xff]  ;;  %v2650_v29 = vld [vmem:[%s2520_s28 + $0xb8] sm:$0xff]  ;;  %v2653_v30 = vld [vmem:[%s2520_s28 + $0xc0] sm:$0xff] }
  0x92   : > { %v2660_v31 = vld [vmem:[%s2520_s28 + $0xc8] sm:$0xff]  ;;  %v2663_v32 = vld [vmem:[%s2520_s28 + $0xd0] sm:$0xff]  ;;  %v2670_v33 = vld [vmem:[%s2520_s28 + $0xd8] sm:$0xff]  ;;  %p2214_p4 = pnand %p2213_p2, %p2207_p7 }
  0x93   : > { %1760 = vmatmul.mubr.msk.f32.vlgmr.msra.gmra.mrb[0].mxu0 %vm292_vm0, %v2540_v7  ;;  %v2673_v34 = vld [vmem:[%s2520_s28 + $0xe0] sm:$0xff]  ;;  %v2680_v35 = vld [vmem:[%s2520_s28 + $0xe8] sm:$0xff]  ;;  %v2683_v36 = vld [vmem:[%s2520_s28 + $0xf0] sm:$0xff] }
  0x94   : > { %1762 = vmatprep.mubr.msk.f32.mxu0 %vm292_vm0, %v2543_v8  ;;  %v2690_v37 = vld [vmem:[%s2520_s28 + $0xf8] sm:$0xff] }
  0x97   : > { %1763 = vmatmul.mubr.msk.f32.gmra.mrb[2].mxu0 %vm292_vm0, %v2550_v9 }
  0x98   : > { %1765 = vmatprep.mubr.msk.f32.mxu0 %vm292_vm0, %v2553_v10 }
  0x9b   : > { %1766 = vmatmul.mubr.msk.f32.gmra.mrb[4].mxu0 %vm292_vm0, %v2560_v11 }
  0x9c   : > { %1768 = vmatprep.mubr.msk.f32.mxu0 %vm292_vm0, %v2563_v12 }
  0x9f   : > { %1769 = vmatmul.mubr.msk.f32.gmra.mrb[6].mxu0 %vm292_vm0, %v2570_v13 }
  0xa0   : > { %1771 = vmatprep.mubr.msk.f32.mxu0 %vm292_vm0, %v2573_v14 }
  0xa3   : > { %1772 = vmatmul.mubr.msk.f32.gmra.mrb[8].mxu0 %vm292_vm0, %v2580_v15 }
  0xa4   : > { %1774 = vmatprep.mubr.msk.f32.mxu0 %vm292_vm0, %v2583_v16 }
  0xa7   : > { %1775 = vmatmul.mubr.msk.f32.gmra.mrb[10].mxu0 %vm292_vm0, %v2590_v17 }
  0xa8   : > { %1777 = vmatprep.mubr.msk.f32.mxu0 %vm292_vm0, %v2593_v18 }
  0xab   : > { %1778 = vmatmul.mubr.msk.f32.gmra.mrb[12].mxu0 %vm292_vm0, %v2600_v19 }
  0xac   : > { %1780 = vmatprep.mubr.msk.f32.mxu0 %vm292_vm0, %v2603_v20 }
  0xaf   : > { %1781 = vmatmul.mubr.msk.f32.gmra.mrb[14].mxu0 %vm292_vm0, %v2610_v21 }
  0xb0   : > { %1783 = vmatprep.mubr.msk.f32.mxu0 %vm292_vm0, %v2613_v22 }
  0xb3   : > { %1784 = vmatmul.mubr.msk.f32.gmra.mrb[16].mxu0 %vm292_vm0, %v2620_v23 }
  0xb4   : > { %1786 = vmatprep.mubr.msk.f32.mxu0 %vm292_vm0, %v2623_v24 }
  0xb7   : > { %1787 = vmatmul.mubr.msk.f32.gmra.mrb[18].mxu0 %vm292_vm0, %v2630_v25 }
  0xb8   : > { %1789 = vmatprep.mubr.msk.f32.mxu0 %vm292_vm0, %v2633_v26 }
  0xbb   : > { %1790 = vmatmul.mubr.msk.f32.gmra.mrb[20].mxu0 %vm292_vm0, %v2640_v27 }
  0xbc   : > { %1792 = vmatprep.mubr.msk.f32.mxu0 %vm292_vm0, %v2643_v28 }
  0xbf   : > { %1793 = vmatmul.mubr.msk.f32.gmra.mrb[22].mxu0 %vm292_vm0, %v2650_v29 }
  0xc0   : > { %1795 = vmatprep.mubr.msk.f32.mxu0 %vm292_vm0, %v2653_v30 }
  0xc3   : > { %1796 = vmatmul.mubr.msk.f32.gmra.mrb[24].mxu0 %vm292_vm0, %v2660_v31 }
  0xc4   : > { %1798 = vmatprep.mubr.msk.f32.mxu0 %vm292_vm0, %v2663_v32 }
  0xc7   : > { %1799 = vmatmul.mubr.msk.f32.gmra.mrb[26].mxu0 %vm292_vm0, %v2670_v33 }
  0xc8   : > { %1801 = vmatprep.mubr.msk.f32.mxu0 %vm292_vm0, %v2673_v34 }
  0xcb   : > { %1802 = vmatmul.mubr.msk.f32.gmra.mrb[28].mxu0 %vm292_vm0, %v2680_v35 }
  0xcc   : > { %1804 = vmatprep.mubr.msk.f32.mxu0 %vm292_vm0, %v2683_v36 }
  0xcf   : > { %1805 = vmatmul.mubr.msk.f32.gmra.mrb[30].mxu0 %vm292_vm0, %v2690_v37 }
 0x166   : > { %v1761_v38 = vpop.f32.mrb[0].mxu0 }
 0x167   : > { %v615_v39 = vsel %vm292_vm0, %v1761_v38, 0.0  ;;  %v455_v40 = vpop.f32.mrb[1].mxu0 }
 0x168   : > { %v614_v41 = vsel %vm292_vm0, %v455_v40, 0.0 }
 0x169   : > { %v616_v42 = vadd.f32 %v615_v39, %v614_v41 }
 0x16a   : > { %v1764_v43 = vpop.f32.mrb[2].mxu0 }
 0x16b   : > { %v465_v44 = vpop.f32.mrb[3].mxu0  ;;  %v619_v47 = vsel %vm292_vm0, %v1764_v43, 0.0 }
 0x16c   : > { %v617_v45 = vsel %vm292_vm0, %v465_v44, 0.0 }
 0x16d   : > { %v618_v46 = vadd.f32 %v617_v45, %v616_v42 }
 0x16e   : > { %v1767_v48 = vpop.f32.mrb[4].mxu0 }
 0x16f   : > { %v475_v49 = vpop.f32.mrb[5].mxu0  ;;  %v620_v50 = vadd.f32 %v619_v47, %v618_v46  ;;  %v623_v53 = vsel %vm292_vm0, %v1767_v48, 0.0 }
 0x170   : > { %v621_v51 = vsel %vm292_vm0, %v475_v49, 0.0 }
 0x171   : > { %v622_v52 = vadd.f32 %v621_v51, %v620_v50 }
 0x172   : > { %v1770_v54 = vpop.f32.mrb[6].mxu0 }
 0x173   : > { %v485_v55 = vpop.f32.mrb[7].mxu0  ;;  %v624_v56 = vadd.f32 %v623_v53, %v622_v52  ;;  %v627_v59 = vsel %vm292_vm0, %v1770_v54, 0.0 }
 0x174   : > { %v625_v57 = vsel %vm292_vm0, %v485_v55, 0.0 }
 0x175   : > { %v626_v58 = vadd.f32 %v625_v57, %v624_v56 }
 0x176   : > { %v1773_v60 = vpop.f32.mrb[8].mxu0 }
 0x177   : > { %v495_v61 = vpop.f32.mrb[9].mxu0  ;;  %v628_v62 = vadd.f32 %v627_v59, %v626_v58  ;;  %v631_v1 = vsel %vm292_vm0, %v1773_v60, 0.0 }
 0x178   : > { %v629_v63 = vsel %vm292_vm0, %v495_v61, 0.0 }
 0x179   : > { %v630_v0 = vadd.f32 %v629_v63, %v628_v62 }
 0x17a   : > { %v1776_v2 = vpop.f32.mrb[10].mxu0 }
 0x17b   : > { %v505_v3 = vpop.f32.mrb[11].mxu0  ;;  %v632_v4 = vadd.f32 %v631_v1, %v630_v0  ;;  %v635_v39 = vsel %vm292_vm0, %v1776_v2, 0.0 }
 0x17c   : > { %v633_v6 = vsel %vm292_vm0, %v505_v3, 0.0 }
 0x17d   : > { %v634_v38 = vadd.f32 %v633_v6, %v632_v4 }
 0x17e   : > { %v1779_v40 = vpop.f32.mrb[12].mxu0 }
 0x17f   : > { %v515_v41 = vpop.f32.mrb[13].mxu0  ;;  %v636_v42 = vadd.f32 %v635_v39, %v634_v38  ;;  %v639_v45 = vsel %vm292_vm0, %v1779_v40, 0.0 }
 0x180   : > { %v637_v43 = vsel %vm292_vm0, %v515_v41, 0.0 }
 0x181   : > { %v638_v44 = vadd.f32 %v637_v43, %v636_v42 }
 0x182   : > { %v1782_v46 = vpop.f32.mrb[14].mxu0 }
 0x183   : > { %v525_v47 = vpop.f32.mrb[15].mxu0  ;;  %v640_v48 = vadd.f32 %v639_v45, %v638_v44  ;;  %v643_v51 = vsel %vm292_vm0, %v1782_v46, 0.0 }
 0x184   : > { %v641_v49 = vsel %vm292_vm0, %v525_v47, 0.0 }
 0x185   : > { %v642_v50 = vadd.f32 %v641_v49, %v640_v48 }
 0x186   : > { %v1785_v52 = vpop.f32.mrb[16].mxu0 }
 0x187   : > { %v535_v53 = vpop.f32.mrb[17].mxu0  ;;  %v644_v54 = vadd.f32 %v643_v51, %v642_v50  ;;  %v647_v57 = vsel %vm292_vm0, %v1785_v52, 0.0 }
 0x188   : > { %v645_v55 = vsel %vm292_vm0, %v535_v53, 0.0 }
 0x189   : > { %v646_v56 = vadd.f32 %v645_v55, %v644_v54 }
 0x18a   : > { %v1788_v58 = vpop.f32.mrb[18].mxu0 }
 0x18b   : > { %v545_v59 = vpop.f32.mrb[19].mxu0  ;;  %v648_v60 = vadd.f32 %v647_v57, %v646_v56  ;;  %v651_v63 = vsel %vm292_vm0, %v1788_v58, 0.0 }
 0x18c   : > { %v649_v61 = vsel %vm292_vm0, %v545_v59, 0.0 }
 0x18d   : > { %v650_v62 = vadd.f32 %v649_v61, %v648_v60 }
 0x18e   : > { %v1791_v0 = vpop.f32.mrb[20].mxu0 }
 0x18f   : > { %v555_v1 = vpop.f32.mrb[21].mxu0  ;;  %v652_v2 = vadd.f32 %v651_v63, %v650_v62  ;;  %v655_v6 = vsel %vm292_vm0, %v1791_v0, 0.0 }
 0x190   : > { %v653_v3 = vsel %vm292_vm0, %v555_v1, 0.0 }
 0x191   : > { %v654_v4 = vadd.f32 %v653_v3, %v652_v2 }
 0x192   : > { %v1794_v38 = vpop.f32.mrb[22].mxu0 }
 0x193   : > { %v565_v39 = vpop.f32.mrb[23].mxu0  ;;  %v656_v40 = vadd.f32 %v655_v6, %v654_v4  ;;  %v659_v43 = vsel %vm292_vm0, %v1794_v38, 0.0 }
 0x194   : > { %v657_v41 = vsel %vm292_vm0, %v565_v39, 0.0 }
 0x195   : > { %v658_v42 = vadd.f32 %v657_v41, %v656_v40 }
 0x196   : > { %v1797_v44 = vpop.f32.mrb[24].mxu0 }
 0x197   : > { %v575_v45 = vpop.f32.mrb[25].mxu0  ;;  %v660_v46 = vadd.f32 %v659_v43, %v658_v42  ;;  %v663_v49 = vsel %vm292_vm0, %v1797_v44, 0.0 }
 0x198   : > { %v661_v47 = vsel %vm292_vm0, %v575_v45, 0.0 }
 0x199   : > { %v662_v48 = vadd.f32 %v661_v47, %v660_v46 }
 0x19a   : > { %v1800_v50 = vpop.f32.mrb[26].mxu0 }
 0x19b   : > { %v585_v51 = vpop.f32.mrb[27].mxu0  ;;  %v664_v52 = vadd.f32 %v663_v49, %v662_v48  ;;  %v667_v55 = vsel %vm292_vm0, %v1800_v50, 0.0 }
 0x19c   : > { %v665_v53 = vsel %vm292_vm0, %v585_v51, 0.0 }
 0x19d   : > { %v666_v54 = vadd.f32 %v665_v53, %v664_v52 }
 0x19e   : > { %v1803_v56 = vpop.f32.mrb[28].mxu0 }
 0x19f   : > { %v595_v57 = vpop.f32.mrb[29].mxu0  ;;  %v668_v58 = vadd.f32 %v667_v55, %v666_v54  ;;  %v671_v61 = vsel %vm292_vm0, %v1803_v56, 0.0 }
 0x1a0   : > { %v669_v59 = vsel %vm292_vm0, %v595_v57, 0.0 }
 0x1a1   : > { %v670_v60 = vadd.f32 %v669_v59, %v668_v58 }
 0x1a2   : > { %v1806_v62 = vpop.f32.mrb[30].mxu0 }
 0x1a3   : > { %v605_v63 = vpop.f32.mrb[31].mxu0  ;;  %v672_v0 = vadd.f32 %v671_v61, %v670_v60  ;;  %v675_v3 = vsel %vm292_vm0, %v1806_v62, 0.0 }
 0x1a4   : > { %v673_v1 = vsel %vm292_vm0, %v605_v63, 0.0 }
 0x1a5   : > { %v674_v2 = vadd.f32 %v673_v1, %v672_v0 }
 0x1a7   : > { %v676_v4 = vadd.f32 %v675_v3, %v674_v2 }
 0x1a9   : > { %v677_v6 = vrot.slane %v676_v4, 4 }
 0x1ab   : > { %v678_v38 = vadd.f32 %v677_v6, %v676_v4 }
 0x1ad   : > { %v679_v39 = vrot.slane %v678_v38, 2 }
 0x1af   : > { %v680_v40 = vadd.f32 %v679_v39, %v678_v38 }
 0x1b1   : > { %v681_v41 = vrot.slane %v680_v40, 1 }
 0x1b3   : > { %v682_v42 = vadd.f32 %v681_v41, %v680_v40 }
 0x1b5   : > { %v2726_v43 = vmul.f32 0.00390625, %v682_v42 }
 0x1b7   : > { %v2730_v44 = vsub.f32 %v2540_v7, %v2726_v43  ;;  %v2734_v45 = vsub.f32 %v2535_v5, %v2726_v43  ;;  %v2738_v46 = vsub.f32 %v2543_v8, %v2726_v43  ;;  %v2746_v49 = vsub.f32 %v2550_v9, %v2726_v43 }
 0x1b8   : > { %v2750_v7 = vsub.f32 %v2553_v10, %v2726_v43  ;;  %v2759_v8 = vsub.f32 %v2560_v11, %v2726_v43  ;;  %v2765_v10 = vsub.f32 %v2563_v12, %v2726_v43  ;;  %v2773_v51 = vsub.f32 %v2570_v13, %v2726_v43 }
 0x1b9   : > { %v717_v47 = vmul.f32 %v2730_v44, %v2730_v44  ;;  %v716_v48 = vmul.f32 %v2734_v45, %v2734_v45  ;;  %v718_v5 = vmul.f32 %v2738_v46, %v2738_v46  ;;  %v719_v9 = vmul.f32 %v2746_v49, %v2746_v49 }
 0x1ba   : > { %v720_v50 = vmul.f32 %v2750_v7, %v2750_v7  ;;  %v721_v11 = vmul.f32 %v2759_v8, %v2759_v8  ;;  %v2779_v52 = vsub.f32 %v2573_v14, %v2726_v43  ;;  %v722_v12 = vmul.f32 %v2765_v10, %v2765_v10 }
 0x1bb   : > { %1815 = vmatprep.mubr.msk.f32.mxu1 %vm292_vm0, %v716_v48  ;;  %v2787_v53 = vsub.f32 %v2580_v15, %v2726_v43  ;;  %v723_v13 = vmul.f32 %v2773_v51, %v2773_v51  ;;  %v2793_v54 = vsub.f32 %v2583_v16, %v2726_v43  ;;  %v2801_v55 = vsub.f32 %v2590_v17, %v2726_v43 }
 0x1bc   : > { %1816 = vmatmul.mubr.msk.f32.vlgmr.msra.gmra.mrb[0].mxu1 %vm292_vm0, %v717_v47  ;;  %v724_v14 = vmul.f32 %v2779_v52, %v2779_v52  ;;  %v2807_v56 = vsub.f32 %v2593_v18, %v2726_v43  ;;  %v2815_v57 = vsub.f32 %v2600_v19, %v2726_v43  ;;  %v2821_v58 = vsub.f32 %v2603_v20, %v2726_v43 }
 0x1bd   : > { %1818 = vmatprep.mubr.msk.f32.mxu1 %vm292_vm0, %v718_v5  ;;  %v725_v15 = vmul.f32 %v2787_v53, %v2787_v53  ;;  %v726_v16 = vmul.f32 %v2793_v54, %v2793_v54  ;;  %v727_v17 = vmul.f32 %v2801_v55, %v2801_v55  ;;  %v2829_v59 = vsub.f32 %v2610_v21, %v2726_v43 }
 0x1be   : > { %v728_v18 = vmul.f32 %v2807_v56, %v2807_v56  ;;  %v729_v19 = vmul.f32 %v2815_v57, %v2815_v57  ;;  %v2835_v60 = vsub.f32 %v2613_v22, %v2726_v43  ;;  %v730_v20 = vmul.f32 %v2821_v58, %v2821_v58 }
 0x1bf   : > { %v2843_v61 = vsub.f32 %v2620_v23, %v2726_v43  ;;  %v731_v21 = vmul.f32 %v2829_v59, %v2829_v59  ;;  %v2849_v62 = vsub.f32 %v2623_v24, %v2726_v43  ;;  %v2857_v63 = vsub.f32 %v2630_v25, %v2726_v43 }
 0x1c0   : > { %1819 = vmatmul.mubr.msk.f32.gmra.mrb[2].mxu1 %vm292_vm0, %v719_v9  ;;  %v732_v22 = vmul.f32 %v2835_v60, %v2835_v60  ;;  %v2863_v0 = vsub.f32 %v2633_v26, %v2726_v43  ;;  %v2871_v1 = vsub.f32 %v2640_v27, %v2726_v43  ;;  %v2877_v2 = vsub.f32 %v2643_v28, %v2726_v43 }
 0x1c1   : > { %1821 = vmatprep.mubr.msk.f32.mxu1 %vm292_vm0, %v720_v50  ;;  %v733_v23 = vmul.f32 %v2843_v61, %v2843_v61  ;;  %v734_v24 = vmul.f32 %v2849_v62, %v2849_v62  ;;  %v735_v25 = vmul.f32 %v2857_v63, %v2857_v63  ;;  %v2885_v3 = vsub.f32 %v2650_v29, %v2726_v43 }
 0x1c2   : > { %v736_v26 = vmul.f32 %v2863_v0, %v2863_v0  ;;  %v737_v27 = vmul.f32 %v2871_v1, %v2871_v1  ;;  %v2891_v4 = vsub.f32 %v2653_v30, %v2726_v43  ;;  %v738_v28 = vmul.f32 %v2877_v2, %v2877_v2 }
 0x1c3   : > { %v2899_v6 = vsub.f32 %v2660_v31, %v2726_v43  ;;  %v739_v29 = vmul.f32 %v2885_v3, %v2885_v3  ;;  %v2905_v38 = vsub.f32 %v2663_v32, %v2726_v43  ;;  %v2913_v39 = vsub.f32 %v2670_v33, %v2726_v43 }
 0x1c4   : > { %1822 = vmatmul.mubr.msk.f32.gmra.mrb[4].mxu1 %vm292_vm0, %v721_v11  ;;  %v740_v30 = vmul.f32 %v2891_v4, %v2891_v4  ;;  %v2919_v40 = vsub.f32 %v2673_v34, %v2726_v43  ;;  %v2927_v41 = vsub.f32 %v2680_v35, %v2726_v43  ;;  %v2933_v42 = vsub.f32 %v2683_v36, %v2726_v43 }
 0x1c5   : > { %1824 = vmatprep.mubr.msk.f32.mxu1 %vm292_vm0, %v722_v12  ;;  %v741_v31 = vmul.f32 %v2899_v6, %v2899_v6  ;;  %v742_v32 = vmul.f32 %v2905_v38, %v2905_v38  ;;  %v743_v33 = vmul.f32 %v2913_v39, %v2913_v39  ;;  %v2941_v47 = vsub.f32 %v2690_v37, %v2726_v43 }
 0x1c6   : > { %v744_v34 = vmul.f32 %v2919_v40, %v2919_v40  ;;  %v745_v35 = vmul.f32 %v2927_v41, %v2927_v41  ;;  %v746_v48 = vmul.f32 %v2933_v42, %v2933_v42 }
 0x1c7   : > { %v747_v36 = vmul.f32 %v2941_v47, %v2941_v47 }
 0x1c8   : > { %1825 = vmatmul.mubr.msk.f32.gmra.mrb[6].mxu1 %vm292_vm0, %v723_v13 }
 0x1c9   : > { %1827 = vmatprep.mubr.msk.f32.mxu1 %vm292_vm0, %v724_v14 }
 0x1cc   : > { %1828 = vmatmul.mubr.msk.f32.gmra.mrb[8].mxu1 %vm292_vm0, %v725_v15 }
 0x1cd   : > { %1830 = vmatprep.mubr.msk.f32.mxu1 %vm292_vm0, %v726_v16 }
 0x1d0   : > { %1831 = vmatmul.mubr.msk.f32.gmra.mrb[10].mxu1 %vm292_vm0, %v727_v17 }
 0x1d1   : > { %1833 = vmatprep.mubr.msk.f32.mxu1 %vm292_vm0, %v728_v18 }
 0x1d4   : > { %1834 = vmatmul.mubr.msk.f32.gmra.mrb[12].mxu1 %vm292_vm0, %v729_v19 }
 0x1d5   : > { %1836 = vmatprep.mubr.msk.f32.mxu1 %vm292_vm0, %v730_v20 }
 0x1d8   : > { %1837 = vmatmul.mubr.msk.f32.gmra.mrb[14].mxu1 %vm292_vm0, %v731_v21 }
 0x1d9   : > { %1839 = vmatprep.mubr.msk.f32.mxu1 %vm292_vm0, %v732_v22 }
 0x1dc   : > { %1840 = vmatmul.mubr.msk.f32.gmra.mrb[16].mxu1 %vm292_vm0, %v733_v23 }
 0x1dd   : > { %1842 = vmatprep.mubr.msk.f32.mxu1 %vm292_vm0, %v734_v24 }
 0x1e0   : > { %1843 = vmatmul.mubr.msk.f32.gmra.mrb[18].mxu1 %vm292_vm0, %v735_v25 }
 0x1e1   : > { %1845 = vmatprep.mubr.msk.f32.mxu1 %vm292_vm0, %v736_v26 }
 0x1e4   : > { %1846 = vmatmul.mubr.msk.f32.gmra.mrb[20].mxu1 %vm292_vm0, %v737_v27 }
 0x1e5   : > { %1848 = vmatprep.mubr.msk.f32.mxu1 %vm292_vm0, %v738_v28 }
 0x1e8   : > { %1849 = vmatmul.mubr.msk.f32.gmra.mrb[22].mxu1 %vm292_vm0, %v739_v29 }
 0x1e9   : > { %1851 = vmatprep.mubr.msk.f32.mxu1 %vm292_vm0, %v740_v30 }
 0x1ec   : > { %1852 = vmatmul.mubr.msk.f32.gmra.mrb[24].mxu1 %vm292_vm0, %v741_v31 }
 0x1ed   : > { %1854 = vmatprep.mubr.msk.f32.mxu1 %vm292_vm0, %v742_v32 }
 0x1f0   : > { %1855 = vmatmul.mubr.msk.f32.gmra.mrb[26].mxu1 %vm292_vm0, %v743_v33 }
 0x1f1   : > { %1857 = vmatprep.mubr.msk.f32.mxu1 %vm292_vm0, %v744_v34 }
 0x1f4   : > { %1858 = vmatmul.mubr.msk.f32.gmra.mrb[28].mxu1 %vm292_vm0, %v745_v35 }
 0x1f5   : > { %1860 = vmatprep.mubr.msk.f32.mxu1 %vm292_vm0, %v746_v48 }
 0x1f8   : > { %1861 = vmatmul.mubr.msk.f32.gmra.mrb[30].mxu1 %vm292_vm0, %v747_v36 }
 0x28f   : > { %v1817_v5 = vpop.f32.mrb[0].mxu1 }
 0x290   : > { %v1070_v9 = vsel %vm292_vm0, %v1817_v5, 0.0  ;;  %v910_v37 = vpop.f32.mrb[1].mxu1 }
 0x291   : > { %v1069_v43 = vsel %vm292_vm0, %v910_v37, 0.0 }
 0x292   : > { %v1071_v50 = vadd.f32 %v1070_v9, %v1069_v43 }
 0x293   : > { %v1820_v11 = vpop.f32.mrb[2].mxu1 }
 0x294   : > { %v920_v12 = vpop.f32.mrb[3].mxu1  ;;  %v1074_v15 = vsel %vm292_vm0, %v1820_v11, 0.0 }
 0x295   : > { %v1072_v13 = vsel %vm292_vm0, %v920_v12, 0.0 }
 0x296   : > { %v1073_v14 = vadd.f32 %v1072_v13, %v1071_v50 }
 0x297   : > { %v1823_v16 = vpop.f32.mrb[4].mxu1 }
 0x298   : > { %v930_v17 = vpop.f32.mrb[5].mxu1  ;;  %v1075_v18 = vadd.f32 %v1074_v15, %v1073_v14  ;;  %v1078_v21 = vsel %vm292_vm0, %v1823_v16, 0.0 }
 0x299   : > { %v1076_v19 = vsel %vm292_vm0, %v930_v17, 0.0 }
 0x29a   : > { %v1077_v20 = vadd.f32 %v1076_v19, %v1075_v18 }
 0x29b   : > { %v1826_v22 = vpop.f32.mrb[6].mxu1 }
 0x29c   : > { %v940_v23 = vpop.f32.mrb[7].mxu1  ;;  %v1079_v24 = vadd.f32 %v1078_v21, %v1077_v20  ;;  %v1082_v27 = vsel %vm292_vm0, %v1826_v22, 0.0 }
 0x29d   : > { %v1080_v25 = vsel %vm292_vm0, %v940_v23, 0.0 }
 0x29e   : > { %v1081_v26 = vadd.f32 %v1080_v25, %v1079_v24 }
 0x29f   : > { %v1829_v28 = vpop.f32.mrb[8].mxu1 }
 0x2a0   : > { %v950_v29 = vpop.f32.mrb[9].mxu1  ;;  %v1083_v30 = vadd.f32 %v1082_v27, %v1081_v26  ;;  %v1086_v33 = vsel %vm292_vm0, %v1829_v28, 0.0 }
 0x2a1   : > { %v1084_v31 = vsel %vm292_vm0, %v950_v29, 0.0 }
 0x2a2   : > { %v1085_v32 = vadd.f32 %v1084_v31, %v1083_v30 }
 0x2a3   : > { %v1832_v34 = vpop.f32.mrb[10].mxu1 }
 0x2a4   : > { %v960_v35 = vpop.f32.mrb[11].mxu1  ;;  %v1087_v48 = vadd.f32 %v1086_v33, %v1085_v32  ;;  %v1090_v9 = vsel %vm292_vm0, %v1832_v34, 0.0 }
 0x2a5   : > { %v1088_v36 = vsel %vm292_vm0, %v960_v35, 0.0 }
 0x2a6   : > { %v1089_v5 = vadd.f32 %v1088_v36, %v1087_v48 }
 0x2a7   : > { %v1835_v37 = vpop.f32.mrb[12].mxu1 }
 0x2a8   : > { %v970_v43 = vpop.f32.mrb[13].mxu1  ;;  %v1091_v50 = vadd.f32 %v1090_v9, %v1089_v5  ;;  %v1094_v13 = vsel %vm292_vm0, %v1835_v37, 0.0 }
 0x2a9   : > { %v1092_v11 = vsel %vm292_vm0, %v970_v43, 0.0 }
 0x2aa   : > { %v1093_v12 = vadd.f32 %v1092_v11, %v1091_v50 }
 0x2ab   : > { %v1838_v14 = vpop.f32.mrb[14].mxu1 }
 0x2ac   : > { %v980_v15 = vpop.f32.mrb[15].mxu1  ;;  %v1095_v16 = vadd.f32 %v1094_v13, %v1093_v12  ;;  %v1098_v19 = vsel %vm292_vm0, %v1838_v14, 0.0 }
 0x2ad   : > { %v1096_v17 = vsel %vm292_vm0, %v980_v15, 0.0 }
 0x2ae   : > { %v1097_v18 = vadd.f32 %v1096_v17, %v1095_v16 }
 0x2af   : > { %v1841_v20 = vpop.f32.mrb[16].mxu1 }
 0x2b0   : > { %v990_v21 = vpop.f32.mrb[17].mxu1  ;;  %v1099_v22 = vadd.f32 %v1098_v19, %v1097_v18  ;;  %v1102_v25 = vsel %vm292_vm0, %v1841_v20, 0.0 }
 0x2b1   : > { %v1100_v23 = vsel %vm292_vm0, %v990_v21, 0.0 }
 0x2b2   : > { %v1101_v24 = vadd.f32 %v1100_v23, %v1099_v22 }
 0x2b3   : > { %v1844_v26 = vpop.f32.mrb[18].mxu1 }
 0x2b4   : > { %v1000_v27 = vpop.f32.mrb[19].mxu1  ;;  %v1103_v28 = vadd.f32 %v1102_v25, %v1101_v24  ;;  %v1106_v31 = vsel %vm292_vm0, %v1844_v26, 0.0 }
 0x2b5   : > { %v1104_v29 = vsel %vm292_vm0, %v1000_v27, 0.0 }
 0x2b6   : > { %v1105_v30 = vadd.f32 %v1104_v29, %v1103_v28 }
 0x2b7   : > { %v1847_v32 = vpop.f32.mrb[20].mxu1 }
 0x2b8   : > { %v1010_v33 = vpop.f32.mrb[21].mxu1  ;;  %v1107_v34 = vadd.f32 %v1106_v31, %v1105_v30  ;;  %v1110_v36 = vsel %vm292_vm0, %v1847_v32, 0.0 }
 0x2b9   : > { %v1108_v35 = vsel %vm292_vm0, %v1010_v33, 0.0 }
 0x2ba   : > { %v1109_v48 = vadd.f32 %v1108_v35, %v1107_v34 }
 0x2bb   : > { %v1850_v5 = vpop.f32.mrb[22].mxu1 }
 0x2bc   : > { %v1020_v9 = vpop.f32.mrb[23].mxu1  ;;  %v1111_v37 = vadd.f32 %v1110_v36, %v1109_v48  ;;  %v1114_v11 = vsel %vm292_vm0, %v1850_v5, 0.0 }
 0x2bd   : > { %v1112_v43 = vsel %vm292_vm0, %v1020_v9, 0.0 }
 0x2be   : > { %v1113_v50 = vadd.f32 %v1112_v43, %v1111_v37 }
 0x2bf   : > { %v1853_v12 = vpop.f32.mrb[24].mxu1 }
 0x2c0   : > { %v1030_v13 = vpop.f32.mrb[25].mxu1  ;;  %v1115_v14 = vadd.f32 %v1114_v11, %v1113_v50  ;;  %v1118_v17 = vsel %vm292_vm0, %v1853_v12, 0.0 }
 0x2c1   : > { %v1116_v15 = vsel %vm292_vm0, %v1030_v13, 0.0 }
 0x2c2   : > { %v1117_v16 = vadd.f32 %v1116_v15, %v1115_v14 }
 0x2c3   : > { %v1856_v18 = vpop.f32.mrb[26].mxu1 }
 0x2c4   : > { %v1040_v19 = vpop.f32.mrb[27].mxu1  ;;  %v1119_v20 = vadd.f32 %v1118_v17, %v1117_v16  ;;  %v1122_v23 = vsel %vm292_vm0, %v1856_v18, 0.0 }
 0x2c5   : > { %v1120_v21 = vsel %vm292_vm0, %v1040_v19, 0.0 }
 0x2c6   : > { %v1121_v22 = vadd.f32 %v1120_v21, %v1119_v20 }
 0x2c7   : > { %v1859_v24 = vpop.f32.mrb[28].mxu1 }
 0x2c8   : > { %v1050_v25 = vpop.f32.mrb[29].mxu1  ;;  %v1123_v26 = vadd.f32 %v1122_v23, %v1121_v22  ;;  %v1126_v29 = vsel %vm292_vm0, %v1859_v24, 0.0  ;;  %v3004_v24 = vld [vmem:[#allocation7] ss:$0 sm:$0xff] }
 0x2c9   : > { %v1124_v27 = vsel %vm292_vm0, %v1050_v25, 0.0  ;;  %v3022_v25 = vld [vmem:[#allocation8] ss:$0 sm:$0xff] }
 0x2ca   : > { %v1125_v28 = vadd.f32 %v1124_v27, %v1123_v26 }
 0x2cb   : > { %v1862_v30 = vpop.f32.mrb[30].mxu1 }
 0x2cc   : > { %v1060_v31 = vpop.f32.mrb[31].mxu1  ;;  %v1127_v32 = vadd.f32 %v1126_v29, %v1125_v28  ;;  %v1130_v35 = vsel %vm292_vm0, %v1862_v30, 0.0 }
 0x2cd   : > { %v1128_v33 = vsel %vm292_vm0, %v1060_v31, 0.0 }
 0x2ce   : > { %v1129_v34 = vadd.f32 %v1128_v33, %v1127_v32 }
 0x2d0   : > { %v1131_v48 = vadd.f32 %v1130_v35, %v1129_v34 }
 0x2d2   : > { %v1132_v36 = vrot.slane %v1131_v48, 4 }
 0x2d4   : > { %v1133_v5 = vadd.f32 %v1132_v36, %v1131_v48 }
 0x2d6   : > { %v1134_v9 = vrot.slane %v1133_v5, 2 }
 0x2d8   : > { %v1135_v37 = vadd.f32 %v1134_v9, %v1133_v5 }
 0x2da   : > { %v1136_v43 = vrot.slane %v1135_v37, 1 }
 0x2dc   : > { %v1137_v50 = vadd.f32 %v1136_v43, %v1135_v37 }
 0x2de   : > { %v1138_v11 = vmul.f32 0.00390625, %v1137_v50 }
 0x2e0   : > { %v1139_v12 = vadd.f32 1e-05, %v1138_v11 }
 0x2e2   : > { %1960 = vrsqrt.f32 %v1139_v12 }
 0x2ec   : > { %v1961_v13 = vpop.eup %1960 }
 0x2ed   : > { %v1141_v14 = vmul.f32 %v1961_v13, %v2734_v45  ;;  %v1142_v15 = vmul.f32 %v1961_v13, %v2730_v44  ;;  %v1143_v16 = vmul.f32 %v1961_v13, %v2738_v46  ;;  %v1144_v17 = vmul.f32 %v1961_v13, %v2746_v49 }
 0x2ee   : > { %v1145_v18 = vmul.f32 %v1961_v13, %v2750_v7  ;;  %v1146_v19 = vmul.f32 %v1961_v13, %v2759_v8  ;;  %v1147_v20 = vmul.f32 %v1961_v13, %v2765_v10  ;;  %v1148_v21 = vmul.f32 %v1961_v13, %v2773_v51 }
 0x2ef   : > { %v1149_v22 = vmul.f32 %v1961_v13, %v2779_v52  ;;  %v1150_v23 = vmul.f32 %v1961_v13, %v2787_v53  ;;  %v1151_v45 = vmul.f32 %v1961_v13, %v2793_v54  ;;  %v1152_v44 = vmul.f32 %v1961_v13, %v2801_v55 }
 0x2f0   : > { %v1153_v46 = vmul.f32 %v1961_v13, %v2807_v56  ;;  %v1154_v49 = vmul.f32 %v1961_v13, %v2815_v57  ;;  %v1155_v7 = vmul.f32 %v1961_v13, %v2821_v58  ;;  %v1156_v8 = vmul.f32 %v1961_v13, %v2829_v59 }
 0x2f1   : > { %v1157_v10 = vmul.f32 %v1961_v13, %v2835_v60  ;;  %v1158_v51 = vmul.f32 %v1961_v13, %v2843_v61  ;;  %v1159_v52 = vmul.f32 %v1961_v13, %v2849_v62  ;;  %v1160_v53 = vmul.f32 %v1961_v13, %v2857_v63 }
 0x2f2   : > { %v1161_v54 = vmul.f32 %v1961_v13, %v2863_v0  ;;  %v1162_v55 = vmul.f32 %v1961_v13, %v2871_v1  ;;  %v1163_v56 = vmul.f32 %v1961_v13, %v2877_v2  ;;  %v1164_v57 = vmul.f32 %v1961_v13, %v2885_v3 }
 0x2f3   : > { %v1165_v58 = vmul.f32 %v1961_v13, %v2891_v4  ;;  %v1166_v59 = vmul.f32 %v1961_v13, %v2899_v6  ;;  %v1167_v60 = vmul.f32 %v1961_v13, %v2905_v38  ;;  %v1168_v61 = vmul.f32 %v1961_v13, %v2913_v39 }
 0x2f4   : > { %v1169_v62 = vmul.f32 %v1961_v13, %v2919_v40  ;;  %v1170_v63 = vmul.f32 %v1961_v13, %v2927_v41  ;;  %v1171_v0 = vmul.f32 %v1961_v13, %v2933_v42  ;;  %v1172_v1 = vmul.f32 %v1961_v13, %v2941_v47 }
 0x2f5   : > { %v1180_v2 = vmul.f32 %v3004_v24, %v1141_v14  ;;  %v1181_v3 = vmul.f32 %v3004_v24, %v1142_v15  ;;  %v1182_v4 = vmul.f32 %v3004_v24, %v1143_v16  ;;  %v1183_v6 = vmul.f32 %v3004_v24, %v1144_v17 }
 0x2f6   : > { %v1184_v38 = vmul.f32 %v3004_v24, %v1145_v18  ;;  %v1185_v39 = vmul.f32 %v3004_v24, %v1146_v19  ;;  %v1186_v40 = vmul.f32 %v3004_v24, %v1147_v20  ;;  %v1187_v41 = vmul.f32 %v3004_v24, %v1148_v21 }
 0x2f7   : > { %v1188_v42 = vmul.f32 %v3004_v24, %v1149_v22  ;;  %v1189_v47 = vmul.f32 %v3004_v24, %v1150_v23  ;;  %v1190_v26 = vmul.f32 %v3004_v24, %v1151_v45  ;;  %v1191_v27 = vmul.f32 %v3004_v24, %v1152_v44 }
 0x2f8   : > { %v1192_v28 = vmul.f32 %v3004_v24, %v1153_v46  ;;  %v1193_v29 = vmul.f32 %v3004_v24, %v1154_v49  ;;  %v1194_v30 = vmul.f32 %v3004_v24, %v1155_v7  ;;  %v1195_v31 = vmul.f32 %v3004_v24, %v1156_v8 }
 0x2f9   : > { %v1196_v32 = vmul.f32 %v3004_v24, %v1157_v10  ;;  %v3038_v33 = vadd.f32 %v3022_v25, %v1180_v2  ;;  %v3041_v34 = vadd.f32 %v3022_v25, %v1181_v3  ;;  %v3044_v35 = vadd.f32 %v3022_v25, %v1182_v4 }
 0x2fa   : > { %v1197_v48 = vmul.f32 %v3004_v24, %v1158_v51  ;;  %v1198_v36 = vmul.f32 %v3004_v24, %v1159_v52  ;;  %v1199_v5 = vmul.f32 %v3004_v24, %v1160_v53  ;;  %v3050_v9 = vadd.f32 %v3022_v25, %v1183_v6 }
 0x2fb   : > { %v3053_v37 = vmul.f32 %v3004_v24, %v1161_v54  ;;  %v3056_v43 = vmul.f32 %v3004_v24, %v1162_v55  ;;  %v3059_v50 = vmul.f32 %v3004_v24, %v1163_v56  ;;  %v3062_v11 = vadd.f32 %v3022_v25, %v1184_v38 }
 0x2fc   : > { %v3065_v12 = vmul.f32 %v3004_v24, %v1164_v57  ;;  %v3068_v13 = vmul.f32 %v3004_v24, %v1165_v58  ;;  %v3071_v14 = vadd.f32 %v3022_v25, %v1185_v39  ;;  %v3074_v15 = vadd.f32 %v3022_v25, %v1186_v40 }
 0x2fd   : > { %v3077_v16 = vmul.f32 %v3004_v24, %v1166_v59  ;;  %v1251_v17 = vsub.f32 0.0, %v3038_v33  ;;  %v1252_v18 = vsub.f32 0.0, %v3041_v34  ;;  %v1253_v19 = vsub.f32 0.0, %v3044_v35 }
 0x2fe   : > { %v3083_v20 = vmul.f32 %v3004_v24, %v1167_v60  ;;  %v3086_v21 = vmul.f32 %v3004_v24, %v1168_v61  ;;  %v3089_v22 = vadd.f32 %v3022_v25, %v1187_v41  ;;  %v1254_v23 = vsub.f32 0.0, %v3050_v9 }
 0x2ff   : > { %v3093_v45 = vmul.f32 %v3004_v24, %v1169_v62  ;;  %v3096_v44 = vmul.f32 %v3004_v24, %v1170_v63  ;;  %v3099_v46 = vadd.f32 %v3022_v25, %v1188_v42  ;;  %v1255_v49 = vsub.f32 0.0, %v3062_v11 }
 0x300   : > { %v3103_v7 = vmul.f32 %v3004_v24, %v1171_v0  ;;  %v3106_v8 = vadd.f32 %v3022_v25, %v1189_v47  ;;  %v1256_v10 = vsub.f32 0.0, %v3071_v14  ;;  %v1257_v51 = vsub.f32 0.0, %v3074_v15 }
 0x301   : > { %v3111_v52 = vadd.f32 %v3022_v25, %v1190_v26  ;;  %v1283_v53 = vmul.f32 1.442695, %v1251_v17  ;;  %v1285_v54 = vmul.f32 1.442695, %v1252_v18  ;;  %v1287_v55 = vmul.f32 1.442695, %v1253_v19 }
 0x302   : > { %v3114_v56 = vmul.f32 %v3004_v24, %v1172_v1  ;;  %v3117_v57 = vadd.f32 %v3022_v25, %v1191_v27  ;;  %v1258_v58 = vsub.f32 0.0, %v3089_v22  ;;  %v1289_v59 = vmul.f32 1.442695, %v1254_v23 }
 0x303   : > { %v3121_v60 = vadd.f32 %v3022_v25, %v1192_v28  ;;  %v1259_v61 = vsub.f32 0.0, %v3099_v46  ;;  %1962 = vpow2.f32 %v1283_v53  ;;  %v1291_v62 = vmul.f32 1.442695, %v1255_v49 }
 0x304   : > { %v3125_v63 = vadd.f32 %v3022_v25, %v1193_v29  ;;  %v1260_v0 = vsub.f32 0.0, %v3106_v8  ;;  %1964 = vpow2.f32 %v1285_v54  ;;  %v1293_v24 = vmul.f32 1.442695, %v1256_v10 }
 0x305   : > { %v3129_v1 = vadd.f32 %v3022_v25, %v1194_v30  ;;  %v1261_v2 = vsub.f32 0.0, %v3111_v52  ;;  %1966 = vpow2.f32 %v1287_v55  ;;  %v1295_v3 = vmul.f32 1.442695, %v1257_v51 }
 0x306   : > { %v3133_v4 = vadd.f32 %v3022_v25, %v1195_v31  ;;  %v1262_v6 = vsub.f32 0.0, %v3117_v57  ;;  %1968 = vpow2.f32 %v1289_v59  ;;  %v1297_v38 = vmul.f32 1.442695, %v1258_v58 }
 0x307   : > { %v3137_v39 = vadd.f32 %v3022_v25, %v1196_v32  ;;  %v1263_v40 = vsub.f32 0.0, %v3121_v60  ;;  %1970 = vpow2.f32 %v1291_v62  ;;  %v1299_v41 = vmul.f32 1.442695, %v1259_v61 }
 0x308   : > { %v3141_v42 = vadd.f32 %v3022_v25, %v1197_v48  ;;  %v1264_v47 = vsub.f32 0.0, %v3125_v63  ;;  %1972 = vpow2.f32 %v1293_v24  ;;  %v1301_v26 = vmul.f32 1.442695, %v1260_v0 }
 0x309   : > { %v3145_v27 = vadd.f32 %v3022_v25, %v1198_v36  ;;  %v1265_v28 = vsub.f32 0.0, %v3129_v1  ;;  %1974 = vpow2.f32 %v1295_v3  ;;  %v1303_v29 = vmul.f32 1.442695, %v1261_v2 }
 0x30a   : > { %v3149_v30 = vadd.f32 %v3022_v25, %v1199_v5  ;;  %v1266_v31 = vsub.f32 0.0, %v3133_v4  ;;  %1976 = vpow2.f32 %v1297_v38  ;;  %v1305_v32 = vmul.f32 1.442695, %v1262_v6 }
 0x30b   : > { %v3154_v48 = vadd.f32 %v3022_v25, %v3053_v37  ;;  %v1267_v17 = vsub.f32 0.0, %v3137_v39  ;;  %1978 = vpow2.f32 %v1299_v41  ;;  %v1307_v36 = vmul.f32 1.442695, %v1263_v40 }
 0x30c   : > { %v3159_v18 = vadd.f32 %v3022_v25, %v3056_v43  ;;  %v1268_v19 = vsub.f32 0.0, %v3141_v42  ;;  %1980 = vpow2.f32 %v1301_v26  ;;  %v1309_v5 = vmul.f32 1.442695, %v1264_v47 }
 0x30d   : > { %v3162_v23 = vpop.eup %1962  ;;  %v3166_v49 = vadd.f32 %v3022_v25, %v3059_v50  ;;  %v1269_v37 = vsub.f32 0.0, %v3145_v27  ;;  %1982 = vpow2.f32 %v1303_v29  ;;  %v1311_v10 = vmul.f32 1.442695, %v1265_v28 }
 0x30e   : > { %v3169_v51 = vpop.eup %1964  ;;  %v3173_v43 = vadd.f32 %v3022_v25, %v3065_v12  ;;  %v1270_v53 = vsub.f32 0.0, %v3149_v30  ;;  %1984 = vpow2.f32 %v1305_v32  ;;  %v1313_v54 = vmul.f32 1.442695, %v1266_v31 }
 0x30f   : > { %v3176_v55 = vpop.eup %1966  ;;  %v3180_v50 = vadd.f32 %v3022_v25, %v3068_v13  ;;  %v1271_v58 = vsub.f32 0.0, %v3154_v48  ;;  %1986 = vpow2.f32 %v1307_v36  ;;  %v1315_v59 = vmul.f32 1.442695, %v1267_v17 }
 0x310   : > { %v3183_v61 = vpop.eup %1968  ;;  %v3187_v12 = vadd.f32 %v3022_v25, %v3077_v16  ;;  %v1272_v62 = vsub.f32 0.0, %v3159_v18  ;;  %1988 = vpow2.f32 %v1309_v5  ;;  %v1317_v0 = vmul.f32 1.442695, %v1268_v19 }
 0x311   : > { %v3190_v24 = vpop.eup %1970  ;;  %v3194_v13 = vadd.f32 %v3022_v25, %v3083_v20  ;;  %v1273_v2 = vsub.f32 0.0, %v3166_v49  ;;  %1990 = vpow2.f32 %v1311_v10  ;;  %v1319_v3 = vmul.f32 1.442695, %v1269_v37 }
 0x312   : > { %v3197_v6 = vpop.eup %1972  ;;  %v3201_v16 = vadd.f32 %v3022_v25, %v3086_v21  ;;  %v1274_v38 = vsub.f32 0.0, %v3173_v43  ;;  %1992 = vpow2.f32 %v1313_v54  ;;  %v1321_v40 = vmul.f32 1.442695, %v1270_v53 }
 0x313   : > { %v3204_v41 = vpop.eup %1974  ;;  %v3208_v20 = vadd.f32 %v3022_v25, %v3093_v45  ;;  %v1275_v47 = vsub.f32 0.0, %v3180_v50  ;;  %1994 = vpow2.f32 %v1315_v59  ;;  %v1323_v26 = vmul.f32 1.442695, %v1271_v58 }
 0x314   : > { %v3211_v28 = vpop.eup %1976  ;;  %v3215_v21 = vadd.f32 %v3022_v25, %v3096_v44  ;;  %v1276_v29 = vsub.f32 0.0, %v3187_v12  ;;  %1996 = vpow2.f32 %v1317_v0  ;;  %v1325_v31 = vmul.f32 1.442695, %v1272_v62 }
 0x315   : > { %3452 = vst [vmem:[#allocation15_spill] sm:$0xff] %v3208_v20  ;;  %v1979_v32 = vpop.eup %1978  ;;  %v3220_v17 = vadd.f32 %v3022_v25, %v3103_v7  ;;  %v1277_v45 = vsub.f32 0.0, %v3194_v13  ;;  %1998 = vpow2.f32 %v1319_v3  ;;  %v1327_v36 = vmul.f32 1.442695, %v1273_v2 }
 0x316   : > { %3453 = vst [vmem:[#allocation16_spill] sm:$0xff] %v3215_v21  ;;  %v1981_v19 = vpop.eup %1980  ;;  %v3225_v5 = vadd.f32 %v3022_v25, %v3114_v56  ;;  %v1278_v44 = vsub.f32 0.0, %v3201_v16  ;;  %2000 = vpow2.f32 %v1321_v40  ;;  %v1329_v37 = vmul.f32 1.442695, %v1274_v38 }
 0x317   : > { %3454 = vst [vmem:[#allocation17_spill] sm:$0xff] %v3220_v17  ;;  %v1983_v10 = vpop.eup %1982  ;;  %v1279_v53 = vsub.f32 0.0, %v3208_v20  ;;  %2002 = vpow2.f32 %v1323_v26  ;;  %v1331_v54 = vmul.f32 1.442695, %v1275_v47  ;;  %v1280_v58 = vsub.f32 0.0, %v3215_v21 }
 0x318   : > { %v1985_v7 = vpop.eup %1984  ;;  %2004 = vpow2.f32 %v1325_v31  ;;  %v1333_v59 = vmul.f32 1.442695, %v1276_v29  ;;  %v1281_v0 = vsub.f32 0.0, %v3220_v17  ;;  %v1335_v25 = vmul.f32 1.442695, %v1277_v45 }
 0x319   : > { %v1987_v62 = vpop.eup %1986  ;;  %2006 = vpow2.f32 %v1327_v36  ;;  %v1282_v2 = vsub.f32 0.0, %v3225_v5  ;;  %v1337_v3 = vmul.f32 1.442695, %v1278_v44  ;;  %v1339_v40 = vmul.f32 1.442695, %v1279_v53 }
 0x31a   : > { %v1989_v56 = vpop.eup %1988  ;;  %2008 = vpow2.f32 %v1329_v37  ;;  %v1341_v47 = vmul.f32 1.442695, %v1280_v58  ;;  %v1343_v31 = vmul.f32 1.442695, %v1281_v0  ;;  %v1347_v45 = vadd.f32 1.0, %v3162_v23 }
 0x31b   : > { %v1991_v38 = vpop.eup %1990  ;;  %2010 = vpow2.f32 %v1331_v54  ;;  %v1345_v21 = vmul.f32 1.442695, %v1282_v2  ;;  %v1348_v44 = vadd.f32 1.0, %v3169_v51  ;;  %v1349_v53 = vadd.f32 1.0, %v3176_v55 }
 0x31c   : > { %v1993_v26 = vpop.eup %1992  ;;  %2012 = vpow2.f32 %v1333_v59  ;;  %v1350_v58 = vadd.f32 1.0, %v3183_v61  ;;  %v1351_v0 = vadd.f32 1.0, %v3190_v24  ;;  %v1353_v2 = vadd.f32 1.0, %v3204_v41 }
 0x31d   : > { %v1995_v20 = vpop.eup %1994  ;;  %2014 = vpow2.f32 %v1335_v25  ;;  %v1352_v25 = vadd.f32 1.0, %v3197_v6  ;;  %v1358_v41 = vadd.f32 1.0, %v1985_v7 }
 0x31e   : > { %v1997_v29 = vpop.eup %1996  ;;  %2016 = vpow2.f32 %v1337_v3  ;;  %v1355_v3 = vadd.f32 1.0, %v1979_v32  ;;  %v1360_v32 = vadd.f32 1.0, %v1989_v56  ;;  %v1363_v7 = vadd.f32 1.0, %v1995_v20 }
 0x31f   : > { %v1999_v17 = vpop.eup %1998  ;;  %2018 = vpow2.f32 %v1339_v40  ;;  %v1356_v40 = vadd.f32 1.0, %v1981_v19  ;;  %v1361_v19 = vadd.f32 1.0, %v1991_v38 }
 0x320   : > { %v2001_v36 = vpop.eup %2000  ;;  %2020 = vpow2.f32 %v1341_v47  ;;  %v1357_v47 = vadd.f32 1.0, %v1983_v10  ;;  %v1365_v56 = vadd.f32 1.0, %v1999_v17 }
 0x321   : > { %v3234_v37 = vpop.eup %2002  ;;  %2022 = vpow2.f32 %v1343_v31 }
 0x322   : > { %v3237_v54 = vpop.eup %2004  ;;  %2024 = vpow2.f32 %v1345_v21  ;;  %v1354_v21 = vadd.f32 1.0, %v3211_v28  ;;  %v1359_v28 = vadd.f32 1.0, %v1987_v62 }
 0x323   : > { %v3240_v59 = vpop.eup %2006  ;;  %2026 = vrcp.f32 %v1347_v45  ;;  %v1368_v17 = vadd.f32 1.0, %v3237_v54 }
 0x324   : > { %v3243_v23 = vpop.eup %2008  ;;  %2028 = vrcp.f32 %v1348_v44 }
 0x325   : > { %v3246_v51 = vpop.eup %2010  ;;  %2030 = vrcp.f32 %v1349_v53 }
 0x326   : > { %v3249_v55 = vpop.eup %2012  ;;  %2032 = vrcp.f32 %v1350_v58 }
 0x327   : > { %v3252_v61 = vpop.eup %2014  ;;  %2034 = vrcp.f32 %v1351_v0  ;;  %v1362_v0 = vadd.f32 1.0, %v1993_v26 }
 0x328   : > { %v3254_v24 = vpop.eup %2016  ;;  %2036 = vrcp.f32 %v1352_v25 }
 0x329   : > { %v3256_v6 = vpop.eup %2018  ;;  %2038 = vrcp.f32 %v1353_v2 }
 0x32a   : > { %v3258_v31 = vpop.eup %2020  ;;  %2040 = vrcp.f32 %v1354_v21  ;;  %v1364_v21 = vadd.f32 1.0, %v1997_v29  ;;  %v1367_v29 = vadd.f32 1.0, %v3234_v37 }
 0x32b   : > { %v3260_v45 = vpop.eup %2022  ;;  %2042 = vrcp.f32 %v1355_v3 }
 0x32c   : > { %v3262_v44 = vpop.eup %2024  ;;  %2044 = vrcp.f32 %v1356_v40 }
 0x32d   : > { %v2027_v53 = vpop.eup %2026  ;;  %2046 = vrcp.f32 %v1357_v47  ;;  %v1369_v47 = vadd.f32 1.0, %v3240_v59 }
 0x32e   : > { %v2029_v58 = vpop.eup %2028  ;;  %v1380_v10 = vmul.f32 %v2027_v53, %v3038_v33  ;;  %2048 = vrcp.f32 %v1358_v41  ;;  %v1370_v41 = vadd.f32 1.0, %v3243_v23  ;;  %v1373_v53 = vadd.f32 1.0, %v3252_v61 }
 0x32f   : > { %v2031_v25 = vpop.eup %2030  ;;  %v1382_v2 = vmul.f32 %v2029_v58, %v3041_v34  ;;  %2050 = vrcp.f32 %v1359_v28  ;;  %v1371_v28 = vadd.f32 1.0, %v3246_v51  ;;  %v1375_v58 = vadd.f32 1.0, %v3256_v6 }
 0x330   : > { %v2033_v62 = vpop.eup %2032  ;;  %v1384_v3 = vmul.f32 %v2031_v25, %v3044_v35  ;;  %2052 = vrcp.f32 %v1360_v32  ;;  %1443 = vst.msk [vmem:[%s3269_s21] sm:$0xff] %vm292_vm0, %v1380_v10  ;;  %v1366_v35 = vadd.f32 1.0, %v2001_v36  ;;  %v1372_v32 = vadd.f32 1.0, %v3249_v55 }
 0x331   : > { %v2035_v33 = vpop.eup %2034  ;;  %v1386_v20 = vmul.f32 %v2033_v62, %v3050_v9  ;;  %2054 = vrcp.f32 %v1361_v19  ;;  %1444 = vst.msk [vmem:[%s3269_s21 + $0x8] sm:$0xff] %vm292_vm0, %v1382_v2  ;;  %v1374_v19 = vadd.f32 1.0, %v3254_v24  ;;  %v1377_v10 = vadd.f32 1.0, %v3260_v45 }
 0x332   : > { %v2037_v34 = vpop.eup %2036  ;;  %v1388_v38 = vmul.f32 %v2035_v33, %v3062_v11  ;;  %2056 = vrcp.f32 %v1362_v0  ;;  %1445 = vst.msk [vmem:[%s3269_s21 + $0x10] sm:$0xff] %vm292_vm0, %v1384_v3  ;;  %v1376_v0 = vadd.f32 1.0, %v3258_v31  ;;  %v1378_v25 = vadd.f32 1.0, %v3262_v44 }
 0x333   : > { %v2039_v26 = vpop.eup %2038  ;;  %v1390_v40 = vmul.f32 %v2037_v34, %v3071_v14  ;;  %2058 = vrcp.f32 %v1363_v7  ;;  %1446 = vst.msk [vmem:[%s3269_s21 + $0x18] sm:$0xff] %vm292_vm0, %v1386_v20 }
 0x334   : > { %v2041_v9 = vpop.eup %2040  ;;  %v1392_v36 = vmul.f32 %v2039_v26, %v3074_v15  ;;  %2060 = vrcp.f32 %v1364_v21  ;;  %1447 = vst.msk [vmem:[%s3269_s21 + $0x20] sm:$0xff] %vm292_vm0, %v1388_v38  ;;  %v3456_v26 = vld [vmem:[#allocation16_spill] sm:$0xff] }
 0x335   : > { %v2043_v11 = vpop.eup %2042  ;;  %v1394_v37 = vmul.f32 %v2041_v9, %v3089_v22  ;;  %2062 = vrcp.f32 %v1365_v56  ;;  %1448 = vst.msk [vmem:[%s3269_s21 + $0x28] sm:$0xff] %vm292_vm0, %v1390_v40  ;;  %v3457_v40 = vld [vmem:[#allocation17_spill] sm:$0xff] }
 0x336   : > { %v2045_v14 = vpop.eup %2044  ;;  %v1396_v54 = vmul.f32 %v2043_v11, %v3099_v46  ;;  %2064 = vrcp.f32 %v1366_v35  ;;  %1449 = vst.msk [vmem:[%s3269_s21 + $0x30] sm:$0xff] %vm292_vm0, %v1392_v36 }
 0x337   : > { %v2047_v15 = vpop.eup %2046  ;;  %v1398_v59 = vmul.f32 %v2045_v14, %v3106_v8  ;;  %2066 = vrcp.f32 %v1367_v29  ;;  %1450 = vst.msk [vmem:[%s3269_s21 + $0x38] sm:$0xff] %vm292_vm0, %v1394_v37 }
 0x338   : > { %v2049_v22 = vpop.eup %2048  ;;  %v1400_v23 = vmul.f32 %v2047_v15, %v3111_v52  ;;  %2068 = vrcp.f32 %v1368_v17  ;;  %1451 = vst.msk [vmem:[%s3269_s21 + $0x40] sm:$0xff] %vm292_vm0, %v1396_v54 }
 0x339   : > { %v2051_v46 = vpop.eup %2050  ;;  %v1402_v51 = vmul.f32 %v2049_v22, %v3117_v57  ;;  %2070 = vrcp.f32 %v1369_v47  ;;  %1452 = vst.msk [vmem:[%s3269_s21 + $0x48] sm:$0xff] %vm292_vm0, %v1398_v59 }
 0x33a   : > { %v2053_v8 = vpop.eup %2052  ;;  %v1404_v55 = vmul.f32 %v2051_v46, %v3121_v60  ;;  %2072 = vrcp.f32 %v1370_v41  ;;  %1453 = vst.msk [vmem:[%s3269_s21 + $0x50] sm:$0xff] %vm292_vm0, %v1400_v23 }
 0x33b   : > { %v2055_v52 = vpop.eup %2054  ;;  %v1406_v61 = vmul.f32 %v2053_v8, %v3125_v63  ;;  %2074 = vrcp.f32 %v1371_v28  ;;  %1454 = vst.msk [vmem:[%s3269_s21 + $0x58] sm:$0xff] %vm292_vm0, %v1402_v51 }
 0x33c   : > { %v2057_v57 = vpop.eup %2056  ;;  %v1408_v24 = vmul.f32 %v2055_v52, %v3129_v1  ;;  %2076 = vrcp.f32 %v1372_v32  ;;  %1455 = vst.msk [vmem:[%s3269_s21 + $0x60] sm:$0xff] %vm292_vm0, %v1404_v55 }
 0x33d   : > { %v2059_v60 = vpop.eup %2058  ;;  %v1410_v6 = vmul.f32 %v2057_v57, %v3133_v4  ;;  %2078 = vrcp.f32 %v1373_v53  ;;  %1456 = vst.msk [vmem:[%s3269_s21 + $0x68] sm:$0xff] %vm292_vm0, %v1406_v61 }
 0x33e   : > { %v2061_v63 = vpop.eup %2060  ;;  %v1412_v31 = vmul.f32 %v2059_v60, %v3137_v39  ;;  %2080 = vrcp.f32 %v1374_v19  ;;  %1457 = vst.msk [vmem:[%s3269_s21 + $0x70] sm:$0xff] %vm292_vm0, %v1408_v24 }
 0x33f   : > { %v2063_v1 = vpop.eup %2062  ;;  %v1414_v7 = vmul.f32 %v2061_v63, %v3141_v42  ;;  %2082 = vrcp.f32 %v1375_v58  ;;  %1458 = vst.msk [vmem:[%s3269_s21 + $0x78] sm:$0xff] %vm292_vm0, %v1410_v6 }
 0x340   : > { %v2065_v4 = vpop.eup %2064  ;;  %v1416_v45 = vmul.f32 %v2063_v1, %v3145_v27  ;;  %2084 = vrcp.f32 %v1376_v0  ;;  %1459 = vst.msk [vmem:[%s3269_s21 + $0x80] sm:$0xff] %vm292_vm0, %v1412_v31 }
 0x341   : > { %v2067_v44 = vpop.eup %2066  ;;  %v1418_v39 = vmul.f32 %v2065_v4, %v3149_v30  ;;  %2086 = vrcp.f32 %v1377_v10  ;;  %1460 = vst.msk [vmem:[%s3269_s21 + $0x88] sm:$0xff] %vm292_vm0, %v1414_v7 }
 0x342   : > { %v2069_v42 = vpop.eup %2068  ;;  %v1420_v2 = vmul.f32 %v2067_v44, %v3154_v48  ;;  %2088 = vrcp.f32 %v1378_v25  ;;  %1461 = vst.msk [vmem:[%s3269_s21 + $0x90] sm:$0xff] %vm292_vm0, %v1416_v45 }
 0x343   : > { %v2071_v27 = vpop.eup %2070  ;;  %v1422_v62 = vmul.f32 %v2069_v42, %v3159_v18  ;;  %1462 = vst.msk [vmem:[%s3269_s21 + $0x98] sm:$0xff] %vm292_vm0, %v1418_v39 }
 0x344   : > { %v2073_v21 = vpop.eup %2072  ;;  %v1424_v30 = vmul.f32 %v2071_v27, %v3166_v49  ;;  %1463 = vst.msk [vmem:[%s3269_s21 + $0xa0] sm:$0xff] %vm292_vm0, %v1420_v2 }
 0x345   : > { %v2075_v3 = vpop.eup %2074  ;;  %v1426_v48 = vmul.f32 %v2073_v21, %v3173_v43  ;;  %1464 = vst.msk [vmem:[%s3269_s21 + $0xa8] sm:$0xff] %vm292_vm0, %v1422_v62 }
 0x346   : > { %v2077_v33 = vpop.eup %2076  ;;  %v1428_v18 = vmul.f32 %v2075_v3, %v3180_v50  ;;  %1465 = vst.msk [vmem:[%s3269_s21 + $0xb0] sm:$0xff] %vm292_vm0, %v1424_v30 }
 0x347   : > { %v2079_v56 = vpop.eup %2078  ;;  %v1430_v49 = vmul.f32 %v2077_v33, %v3187_v12  ;;  %1466 = vst.msk [vmem:[%s3269_s21 + $0xb8] sm:$0xff] %vm292_vm0, %v1426_v48  ;;  %v3455_v12 = vld [vmem:[#allocation15_spill] sm:$0xff] }
 0x348   : > { %v2081_v20 = vpop.eup %2080  ;;  %v1432_v34 = vmul.f32 %v2079_v56, %v3194_v13  ;;  %1467 = vst.msk [vmem:[%s3269_s21 + $0xc0] sm:$0xff] %vm292_vm0, %v1428_v18 }
 0x349   : > { %v2083_v43 = vpop.eup %2082  ;;  %v1434_v35 = vmul.f32 %v2081_v20, %v3201_v16  ;;  %1468 = vst.msk [vmem:[%s3269_s21 + $0xc8] sm:$0xff] %vm292_vm0, %v1430_v49 }
 0x34a   : > { %v2085_v50 = vpop.eup %2084  ;;  %v1436_v38 = vmul.f32 %v2083_v43, %v3455_v12  ;;  %1469 = vst.msk [vmem:[%s3269_s21 + $0xd0] sm:$0xff] %vm292_vm0, %v1432_v34 }
 0x34b   : > { %v2087_v13 = vpop.eup %2086  ;;  %v1438_v29 = vmul.f32 %v2085_v50, %v3456_v26  ;;  %1470 = vst.msk [vmem:[%s3269_s21 + $0xd8] sm:$0xff] %vm292_vm0, %v1434_v35 }
 0x34c   : > { %v2089_v16 = vpop.eup %2088  ;;  %v1440_v9 = vmul.f32 %v2087_v13, %v3457_v40  ;;  %1471 = vst.msk [vmem:[%s3269_s21 + $0xe0] sm:$0xff] %vm292_vm0, %v1436_v38 }
 0x34d   : > { %v1442_v17 = vmul.f32 %v2089_v16, %v3225_v5  ;;  %1472 = vst.msk [vmem:[%s3269_s21 + $0xe8] sm:$0xff] %vm292_vm0, %v1438_v29 }
 0x34e   : > { %1473 = vst.msk [vmem:[%s3269_s21 + $0xf0] sm:$0xff] %vm292_vm0, %v1440_v9 }
 0x34f   : > { %1474 = vst.msk [vmem:[%s3269_s21 + $0xf8] sm:$0xff] %vm292_vm0, %v1442_v17 }
 0x350   : > { %2217 = shalt.err (!%p2214_p4)
}
 0x351   : > { %s2218_s7 = scalar_lea.hbm %s3374_s8, 4096  ;;  %s2222_s26 = scalar_lea.hbm %s3431_s4, 8192 }
 0x352   : > { %p2219_p9 = scmp.ne.s32.totalorder %s3374_s8, %s2218_s7  ;;  %p2223_p8 = scmp.lt.u32.totalorder %s3374_s8, %s3431_s4 }
 0x353   : > { %p2224_p13 = scmp.lt.u32.totalorder %s2222_s26, %s2218_s7  ;;  %p2226_p10 = scmp.lt.u32.totalorder %s2218_s7, %s3374_s8 }
 0x354   : > { %p2220_p0 = pnand %p2219_p9, %p2463_p5 }
 0x355   : > { %p2225_p6 = por %p2224_p13, %p2223_p8 }
 0x356   : > { %p2221_p11 = pneg %p2220_p0 }
 0x357   : > { %p2227_p3 = por %p2226_p10, %p2225_p6 }
 0x359   : > { %p2228_p7 = pnand %p2227_p3, %p2221_p11 }
 0x35b   : > { %2231 = shalt.err (!%p2228_p7)
}
 0x35c   : > { %s2287_s21 = smov 128   ;;  %s2288_s23 = smov 8  }
 0x35d   : > { %1893 = dma.vmem_to_hbm [thread:$0]  (%p2463_p5), %s3376_s14, 4096, %s3374_s8, %s1476_s11, %s2287_s21, %s2287_s21, %s2288_s23  }
 0x35e PF: > { %s1504_s19 = sand.u32 1, %s2266_s15   ;;  %p3458_p12 = scmp.ne.s32.totalorder %s3439_s22, 0 }
 0x35f   : > { %p3459_p1 = scmp.ge.s32.totalorder %s2278_s18, 2  ;;  %s1505_s20 = scalar_lea.sflag [#allocation4], %s1504_s19 }
 0x361   : > { %p1910_p2 = pnand %p3459_p1, %p3458_p12 }
 0x363   : > { %2261 = dma.done.wait (!%p1910_p2), %s1505_s20, 4096  }
 0x364   : > { %2263 = vsyncadd (!%p1910_p2), %s1505_s20, 4294963200  ;;  %p19_p4 = scmp.ge.s32.totalorder %s2449_s10, 4   ;;  %s3460_s15 = smov %s2270_s16 }
 0x365   : > { %s3461_s16 = smov %s2274_s17  ;;  %s3462_s17 = smov %s2459_s24 }
 0x366   : > { %s3463_s18 = smov %s2449_s10  ;;  %21 = sbr.rel (!%p19_p4) target bundleno = 7 (0x7), region = 93 }
 0x36d   :  { %1510 = vsyncpa [#allocation3], 1 }
 0x36e   :  { %1512 = vsyncpa [#allocation3 + $0x1], 1 }
 0x36f   :  { %1513 = vsyncpa [#allocation6], 1 }
 0x370   :  { %1514 = vsyncpa [#allocation9], 1 }
 0x371   :  { %1515 = vsyncpa [#allocation4], 1 }
 0x372   :  { %1517 = vsyncpa [#allocation4 + $0x1], 1 }

</bundles_post_ra>
